<compile_context>
chip_gen: v6e
topology: v6e:2x2x1
jax: 0.10.0
libtpu: 0.0.40
codegen_flags: <defaults>
</compile_context>

<pallas_src>
import jax
import jax.numpy as jnp
import numpy as np
from jax.experimental import pallas as pl
from jax.experimental.pallas import tpu as pltpu

# ----------------------------- configuration --------------------------------
B = 2            # batch
L = 8            # history length
N = 16           # number of variables / nodes
IN_DIM = 2       # GWNet in_dim
MARK_C = 4       # time-marker channels (index 3 = normalized day-of-year)
END_CH = 512     # end_channels
EVT_DIM = 1024   # event_emb_dim
HID_EVT = 256    # hidden_event_emb_dim
PRED = 12        # pred_len
K_EVT = 3        # events per day-of-year (synthetic, fixed fan-out)
NUM_EMB = 32     # size of synthetic event-embedding table

BN = B * N               # batch folded into matmul rows
HID2 = 2 * END_CH        # fused hidden width: [mm half | ts half]
PRED_PAD = 128           # lane-dense padded output width


# ------------------------------- Pallas kernel -------------------------------
def t3gwnet_kernel(ts_ref, bias1_ref, w1_ref, w2_ref, b2_ref, out_ref):
    # ts_ref    : (BN, END_CH)        f32   ts_encoder output, channels-last, batch folded
    # bias1_ref : (BN, 2*END_CH)      f32   [event-path bias + b_mm1 | b_ts1] per row
    # w1_ref    : (END_CH, 2*END_CH)  bf16  [w_mm1_t | w_ts1]
    # w2_ref    : (2*END_CH, PRED_PAD) bf16 [w_mm2 ; w_ts2], zero-padded lanes
    # b2_ref    : (1, PRED_PAD)       f32   b_mm2 + b_ts2, zero-padded lanes
    ts = ts_ref[...].astype(jnp.bfloat16)
    h = jnp.dot(ts, w1_ref[...], preferred_element_type=jnp.float32) + bias1_ref[...]
    h = jnp.maximum(h, 0.0)                      # ReLU; Dropout(p=0.15) is identity in eval
    out = jnp.dot(h.astype(jnp.bfloat16), w2_ref[...],
                  preferred_element_type=jnp.float32) + b2_ref[...]
    out_ref[...] = out.astype(out_ref.dtype)     # == mm_pred + ts_pred (lane-padded)


def t3gwnet_pallas(ts_flat, bias1, w1_bf16, w2_bf16, b2_pad):
    grid_spec = pltpu.PrefetchScalarGridSpec(
        num_scalar_prefetch=0,
        grid=(1,),                               # single invocation; batch folded into rows
        in_specs=[
            pl.BlockSpec((BN, END_CH), lambda i: (0, 0)),
            pl.BlockSpec((BN, HID2), lambda i: (0, 0)),
            pl.BlockSpec((END_CH, HID2), lambda i: (0, 0)),
            pl.BlockSpec((HID2, PRED_PAD), lambda i: (0, 0)),
            pl.BlockSpec((1, PRED_PAD), lambda i: (0, 0)),
        ],
        out_specs=pl.BlockSpec((BN, PRED_PAD), lambda i: (0, 0)),
    )
    return pl.pallas_call(
        t3gwnet_kernel,
        out_shape=jax.ShapeDtypeStruct((BN, PRED_PAD), jnp.float32),
        grid_spec=grid_spec,
        compiler_params=pltpu.CompilerParams(
            dimension_semantics=("arbitrary",)),
    )(ts_flat, bias1, w1_bf16, w2_bf16, b2_pad)


# ------------------------------ plain-JAX glue --------------------------------
def surrogate_encoder(var_x, p):
    # TODO(synk): GWNet.encoder_forward (Graph WaveNet encoder) is not defined in the
    # provided module; use a deterministic per-node linear+tanh surrogate producing
    # ts_emb with the expected (B, end_channels, N) semantics (kept channels-last here).
    x = jnp.transpose(var_x, (0, 2, 1, 3)).reshape(B, N, L * IN_DIM)   # (B, N, L*in_dim)
    return jnp.tanh(x @ p["w_enc"] + p["b_enc"])                       # (B, N, END_CH)


def event_path_bias(marker_x, p):
    # day-of-year gather + Linear(1024->256) + max over events + the event half of
    # mm_forecaster.conv1 (e @ w_mm1_e + b_mm1).  M<=3 matmul rows: kept in plain JAX.
    doy = jnp.clip((marker_x[:, -1, 0, 3] * 365.0).astype(jnp.int32), 0, 365)   # (B,)
    idx = p["doy2ind_table"][doy]                 # (B, K_EVT)
    evt = p["event_embeddings"][idx]              # (B, K_EVT, EVT_DIM)
    z = evt @ p["w_evt"] + p["b_evt"]             # (B, K_EVT, HID_EVT)
    e = z.max(axis=1)                             # (B, HID_EVT)
    return e @ p["w_mm1_e"] + p["b_mm1"]          # (B, END_CH)


def pack_kernel_params(p):
    # Fuse the two hidden-layer weights (shared ts operand) and the two output heads.
    w1 = jnp.concatenate([p["w_mm1_t"], p["w_ts1"]], axis=1)             # (512, 1024)
    w2 = jnp.concatenate([p["w_mm2"], p["w_ts2"]], axis=0)               # (1024, 12)
    w2 = jnp.pad(w2, ((0, 0), (0, PRED_PAD - PRED)))                     # (1024, 128)
    b2 = jnp.pad(p["b_mm2"] + p["b_ts2"], ((0, 0), (0, PRED_PAD - PRED)))  # (1, 128)
    return {"w1_bf16": w1.astype(jnp.bfloat16),
            "w2_bf16": w2.astype(jnp.bfloat16),
            "b2_pad": b2.astype(jnp.float32)}


def t3gwnet_forward(var_x, marker_x, p, kp):
    ts_emb = surrogate_encoder(var_x, p)                  # (B, N, END_CH)
    evt_bias = event_path_bias(marker_x, p)               # (B, END_CH)
    ts_flat = ts_emb.reshape(BN, END_CH)                  # batch folded into rows
    bias1 = jnp.concatenate(
        [jnp.repeat(evt_bias, N, axis=0),                 # mm half: per-batch event bias
         jnp.broadcast_to(p["b_ts1"], (BN, END_CH))],     # ts half: constant b_ts1
        axis=-1)                                          # (BN, 1024)
    out_pad = t3gwnet_pallas(ts_flat, bias1,
                             kp["w1_bf16"], kp["w2_bf16"], kp["b2_pad"])  # (BN, 128)
    out = out_pad[:, :PRED].reshape(B, N, PRED)
    return jnp.transpose(out, (0, 2, 1))                  # (B, PRED, N) == torch layout


# ------------------------------ reference (JAX, f32) ---------------------------
def reference_forward(var_x, marker_x, p):
    ts_emb = surrogate_encoder(var_x, p)                                   # (B, N, END_CH)
    doy = jnp.clip((marker_x[:, -1, 0, 3] * 365.0).astype(jnp.int32), 0, 365)
    idx = p["doy2ind_table"][doy]
    evt_sel = p["event_embeddings"][idx]                                   # (B, K, EVT_DIM)
    z = evt_sel @ p["w_evt"] + p["b_evt"]
    e = z.max(axis=1)                                                      # (B, HID_EVT)
    e_rep = jnp.broadcast_to(e[:, None, :], (B, N, HID_EVT))
    fused = jnp.concatenate([e_rep, ts_emb], axis=-1)
    w_mm1 = jnp.concatenate([p["w_mm1_e"], p["w_mm1_t"]], axis=0)
    mm_h = jax.nn.relu(fused @ w_mm1 + p["b_mm1"])
    mm_pred = mm_h @ p["w_mm2"] + p["b_mm2"]
    ts_h = jax.nn.relu(ts_emb @ p["w_ts1"] + p["b_ts1"])
    ts_pred = ts_h @ p["w_ts2"] + p["b_ts2"]
    return jnp.transpose(ts_pred + mm_pred, (0, 2, 1))


# ---------------------------------- main ---------------------------------------
def init_params(key):
    ks = jax.random.split(key, 16)
    s = 0.02
    return {
        # surrogate encoder
        "w_enc": s * jax.random.normal(ks[0], (L * IN_DIM, END_CH), jnp.float32),
        "b_enc": s * jax.random.normal(ks[1], (1, END_CH), jnp.float32),
        # event_emb_transform: Linear(1024 -> 256)
        "w_evt": s * jax.random.normal(ks[2], (EVT_DIM, HID_EVT), jnp.float32),
        "b_evt": s * jax.random.normal(ks[3], (1, HID_EVT), jnp.float32),
        # mm_forecaster conv1 (in = HID_EVT + END_CH, out = END_CH), split by channel group
        "w_mm1_e": s * jax.random.normal(ks[4], (HID_EVT, END_CH), jnp.float32),
        "w_mm1_t": s * jax.random.normal(ks[5], (END_CH, END_CH), jnp.float32),
        "b_mm1": s * jax.random.normal(ks[6], (1, END_CH), jnp.float32),
        # mm_forecaster conv2 (END_CH -> PRED)
        "w_mm2": s * jax.random.normal(ks[7], (END_CH, PRED), jnp.float32),
        "b_mm2": s * jax.random.normal(ks[8], (1, PRED), jnp.float32),
        # ts_forecaster conv1/conv2
        "w_ts1": s * jax.random.normal(ks[9], (END_CH, END_CH), jnp.float32),
        "b_ts1": s * jax.random.normal(ks[10], (1, END_CH), jnp.float32),
        "w_ts2": s * jax.random.normal(ks[11], (END_CH, PRED), jnp.float32),
        "b_ts2": s * jax.random.normal(ks[12], (1, PRED), jnp.float32),
        # synthetic event-embedding store (stands in for load_event_embedding's pickle)
        "event_embeddings": s * jax.random.normal(ks[13], (NUM_EMB, EVT_DIM), jnp.float32),
        "doy2ind_table": jax.random.randint(ks[14], (366, K_EVT), 0, NUM_EMB, jnp.int32),
    }


if __name__ == "__main__":
    key = jax.random.PRNGKey(0)
    kp_, kx, km = jax.random.split(key, 3)
    params = init_params(kp_)
    packed = pack_kernel_params(params)

    var_x = jax.random.normal(kx, (B, L, N, IN_DIM), jnp.float32)
    marker_x = jax.random.uniform(km, (B, L, N, MARK_C), jnp.float32)  # channel 3 = doy/365

    out = t3gwnet_forward(var_x, marker_x, params, packed)
    out = jax.block_until_ready(out)

    ref = jax.block_until_ready(reference_forward(var_x, marker_x, params))
    # bf16 matmul operands (f32 accumulation) -> loosened tolerance vs f32 reference.
    np.testing.assert_allclose(np.asarray(out), np.asarray(ref), rtol=2e-2, atol=3e-3)
    assert out.shape == (B, PRED, N)
    print("KERNEL_OK")
</pallas_src>

<mosaic_0001>
module attributes {stable_mosaic.version = 11 : i64} {
  func.func @t3gwnet_kernel(%arg0: i32, %arg1: memref<32x512xf32, #tpu.memory_space<vmem>>, %arg2: memref<32x1024xf32, #tpu.memory_space<vmem>>, %arg3: memref<512x1024xbf16, #tpu.memory_space<vmem>>, %arg4: memref<1024x128xbf16, #tpu.memory_space<vmem>>, %arg5: memref<1x128xf32, #tpu.memory_space<vmem>>, %arg6: memref<32x128xf32, #tpu.memory_space<vmem>>) attributes {dimension_semantics = [#tpu.dimension_semantics<arbitrary>], iteration_bounds = array<i64: 1>, scalar_prefetch = 0 : i64, scratch_operands = 0 : i64, tpu.core_type = #tpu.core_type<tc>, window_params = [{pipeline_mode = #tpu.pipeline_mode<synchronous>, transform_indices = @transform_0, window_bounds = array<i64: 32, 512>}, {pipeline_mode = #tpu.pipeline_mode<synchronous>, transform_indices = @transform_1, window_bounds = array<i64: 32, 1024>}, {pipeline_mode = #tpu.pipeline_mode<synchronous>, transform_indices = @transform_2, window_bounds = array<i64: 512, 1024>}, {pipeline_mode = #tpu.pipeline_mode<synchronous>, transform_indices = @transform_3, window_bounds = array<i64: 1024, 128>}, {pipeline_mode = #tpu.pipeline_mode<synchronous>, transform_indices = @transform_4, window_bounds = array<i64: 1, 128>}, {pipeline_mode = #tpu.pipeline_mode<synchronous>, transform_indices = @transform_5, window_bounds = array<i64: 32, 128>}]} {
    %c0 = arith.constant 0 : index
    %c0_0 = arith.constant 0 : index
    %0 = vector.load %arg1[%c0, %c0_0] : memref<32x512xf32, #tpu.memory_space<vmem>>, vector<32x512xf32>
    %1 = arith.truncf %0 : vector<32x512xf32> to vector<32x512xbf16>
    %c0_1 = arith.constant 0 : index
    %c0_2 = arith.constant 0 : index
    %2 = vector.load %arg3[%c0_1, %c0_2] : memref<512x1024xbf16, #tpu.memory_space<vmem>>, vector<512x1024xbf16>
    %cst = arith.constant dense<0.000000e+00> : vector<32x1024xf32>
    %3 = tpu.matmul %1, %2, %cst {dimension_numbers = #tpu.dot_dimension_numbers<[1], [0], [0], [1], [0, 0, 1, 1], [], []>} : vector<32x512xbf16>, vector<512x1024xbf16>, vector<32x1024xf32> -> vector<32x1024xf32>
    %c0_3 = arith.constant 0 : index
    %c0_4 = arith.constant 0 : index
    %4 = vector.load %arg2[%c0_3, %c0_4] : memref<32x1024xf32, #tpu.memory_space<vmem>>, vector<32x1024xf32>
    %5 = arith.addf %3, %4 : vector<32x1024xf32>
    %cst_5 = arith.constant 0.000000e+00 : f32
    %6 = vector.broadcast %cst_5 : f32 to vector<32x1024xf32>
    %7 = arith.maximumf %5, %6 : vector<32x1024xf32>
    %8 = arith.truncf %7 : vector<32x1024xf32> to vector<32x1024xbf16>
    %c0_6 = arith.constant 0 : index
    %c0_7 = arith.constant 0 : index
    %9 = vector.load %arg4[%c0_6, %c0_7] : memref<1024x128xbf16, #tpu.memory_space<vmem>>, vector<1024x128xbf16>
    %cst_8 = arith.constant dense<0.000000e+00> : vector<32x128xf32>
    %10 = tpu.matmul %8, %9, %cst_8 {dimension_numbers = #tpu.dot_dimension_numbers<[1], [0], [0], [1], [0, 0, 1, 1], [], []>} : vector<32x1024xbf16>, vector<1024x128xbf16>, vector<32x128xf32> -> vector<32x128xf32>
    %c0_9 = arith.constant 0 : index
    %c0_10 = arith.constant 0 : index
    %11 = vector.load %arg5[%c0_9, %c0_10] : memref<1x128xf32, #tpu.memory_space<vmem>>, vector<1x128xf32>
    %12 = vector.broadcast %11 : vector<1x128xf32> to vector<32x128xf32>
    %13 = arith.addf %10, %12 : vector<32x128xf32>
    %c0_11 = arith.constant 0 : index
    %c0_12 = arith.constant 0 : index
    %14 = vector.load %arg6[%c0_11, %c0_12] : memref<32x128xf32, #tpu.memory_space<vmem>>, vector<32x128xf32>
    tpu.vector_store %arg6[%c0_11, %c0_12], %13 {strides = array<i32>} : memref<32x128xf32, #tpu.memory_space<vmem>>, vector<32x128xf32>,
    return
  }
  func.func @transform_0(%arg0: i32) -> (i32, i32) {
    %c0_i32 = arith.constant 0 : i32
    %c0_i32_0 = arith.constant 0 : i32
    %c0_i32_1 = arith.constant 0 : i32
    return %c0_i32, %c0_i32_0 : i32, i32
  }
  func.func @transform_1(%arg0: i32) -> (i32, i32) {
    %c0_i32 = arith.constant 0 : i32
    %c0_i32_0 = arith.constant 0 : i32
    %c0_i32_1 = arith.constant 0 : i32
    return %c0_i32, %c0_i32_0 : i32, i32
  }
  func.func @transform_2(%arg0: i32) -> (i32, i32) {
    %c0_i32 = arith.constant 0 : i32
    %c0_i32_0 = arith.constant 0 : i32
    %c0_i32_1 = arith.constant 0 : i32
    return %c0_i32, %c0_i32_0 : i32, i32
  }
  func.func @transform_3(%arg0: i32) -> (i32, i32) {
    %c0_i32 = arith.constant 0 : i32
    %c0_i32_0 = arith.constant 0 : i32
    %c0_i32_1 = arith.constant 0 : i32
    return %c0_i32, %c0_i32_0 : i32, i32
  }
  func.func @transform_4(%arg0: i32) -> (i32, i32) {
    %c0_i32 = arith.constant 0 : i32
    %c0_i32_0 = arith.constant 0 : i32
    %c0_i32_1 = arith.constant 0 : i32
    return %c0_i32, %c0_i32_0 : i32, i32
  }
  func.func @transform_5(%arg0: i32) -> (i32, i32) {
    %c0_i32 = arith.constant 0 : i32
    %c0_i32_0 = arith.constant 0 : i32
    %c0_i32_1 = arith.constant 0 : i32
    return %c0_i32, %c0_i32_0 : i32, i32
  }
}

</mosaic_0001>

<bundles_post_ra>
// kernel: tpu_custom_call.1
= control target key start
LH: loop header
LB: loop body
LE: loop exit
PB: predicated region body
PF: predicated region fallthrough
CT: control target
= control target key end

     0   :  { %10 = vsyncpa [#allocation3], 0  ;;  %s3619_s0 = inlined_call_operand.hbm [shape: f32[32,512], index: 0, kind: input, shape index: {}]   ;;  %s3620_s1 = inlined_call_operand.hbm [shape: f32[32,1024], index: 1, kind: input, shape index: {}]   ;;  %s3621_s2 = inlined_call_operand.hbm [shape: bf16[512,1024], index: 2, kind: input, shape index: {}]   ;;  %s3622_s3 = inlined_call_operand.hbm [shape: bf16[1024,128], index: 3, kind: input, shape index: {}]   ;;  %s3623_s4 = inlined_call_operand.vmem [shape: f32[1,128], index: 4, kind: input, shape index: {}]   ;;  %s3624_s5 = inlined_call_operand.hbm [shape: f32[32,128], index: 5, kind: output, shape index: {}]  }
   0x1   :  { %11 = vsyncpa [#allocation6], 0 }
   0x2   :  { %12 = vsyncpa [#allocation9], 0 }
   0x3   :  { %13 = vsyncpa [#allocation4], 0  ;;  %s3496_s18 = smov [#allocation5]  }
   0x4   :  { %s31_s19 = sshll.u32 %s3496_s18, 4  ;;  %s32_s19 = int_to_ptr.vmem [resolvable:$true] %s31_s19 }
   0x5   :  { %s3396_s20 = scalar_lea.vmem %s32_s19, 4096  ;;  %p3401_p1 = scmp.lt.s32.totalorder %s32_s19, %s32_s19 }
   0x6   :  { %p3397_p0 = scmp.ne.s32.totalorder %s32_s19, %s3396_s20  ;;  %p3402_p2 = scmp.lt.s32.totalorder %s3396_s20, %s3396_s20 }
   0x8   :  { %p3403_p3 = por %p3402_p2, %p3401_p1 }
   0xa   :  { %p3404_p4 = pnand %p3403_p3, %p3397_p0 }
   0xc   :  { %3407 = shalt.err (!%p3404_p4)
}
   0xd   :  { %s3497_s21 = smov 1024   ;;  %s3498_s22 = smov 64  }
   0xe   :  { %37 = dma.hbm_to_vmem [thread:$0]  %s3620_s1, 4096, %s32_s19, [#allocation6], %s3497_s21, %s3497_s21, %s3498_s22  }
   0xf   :  { %s3499_s25 = smov [#allocation2]  }
  0x10   :  { %s19_s26 = sshll.u32 %s3499_s25, 4  ;;  %s20_s26 = int_to_ptr.vmem [resolvable:$true] %s19_s26 }
  0x11   :  { %s3416_s27 = scalar_lea.vmem %s20_s26, 2048  ;;  %p3421_p6 = scmp.lt.s32.totalorder %s20_s26, %s20_s26 }
  0x12   :  { %p3417_p5 = scmp.ne.s32.totalorder %s20_s26, %s3416_s27  ;;  %p3422_p7 = scmp.lt.s32.totalorder %s3416_s27, %s3416_s27 }
  0x14   :  { %p3423_p8 = por %p3422_p7, %p3421_p6 }
  0x16   :  { %p3424_p9 = pnand %p3423_p8, %p3417_p5 }
  0x18   :  { %3427 = shalt.err (!%p3424_p9)
}
  0x19   :  { %s3500_s28 = smov 512   ;;  %s3501_s29 = smov 32  }
  0x1a   :  { %25 = dma.hbm_to_vmem [thread:$0]  %s3619_s0, 2048, %s20_s26, [#allocation3], %s3500_s28, %s3500_s28, %s3501_s29  }
  0x1b   :  { %s3502_s7 = smov [#allocation7]   ;;  %s3503_s9 = smov [#allocation8]  }
  0x1c   :  { %s43_s8 = sshll.u32 %s3502_s7, 4  ;;  %s55_s1 = sshll.u32 %s3503_s9, 4  ;;  %s44_s8 = int_to_ptr.vmem [resolvable:$true] %s43_s8  ;;  %s56_s1 = int_to_ptr.vmem [resolvable:$true] %s55_s1 }
  0x1d   :  { %s3436_s10 = scalar_lea.vmem %s44_s8, 32768  ;;  %p3441_p11 = scmp.lt.s32.totalorder %s44_s8, %s44_s8 }
  0x1e   :  { %p3437_p10 = scmp.ne.s32.totalorder %s44_s8, %s3436_s10  ;;  %p3442_p12 = scmp.lt.s32.totalorder %s3436_s10, %s3436_s10 }
  0x20   :  { %p3443_p13 = por %p3442_p12, %p3441_p11 }
  0x22   :  { %p3444_p0 = pnand %p3443_p13, %p3437_p10 }
  0x24   :  { %3447 = shalt.err (!%p3444_p0)
}
  0x25   :  { %49 = dma.hbm_to_vmem [thread:$0]  %s3621_s2, 32768, %s44_s8, [#allocation6], %s3500_s28, %s3500_s28, %s3501_s29  }
  0x26   :  { %s3456_s13 = scalar_lea.vmem %s56_s1, 8192  ;;  %p3461_p2 = scmp.lt.s32.totalorder %s56_s1, %s56_s1 }
  0x27   :  { %p3457_p1 = scmp.ne.s32.totalorder %s56_s1, %s3456_s13  ;;  %p3462_p3 = scmp.lt.s32.totalorder %s3456_s13, %s3456_s13 }
  0x29   :  { %p3463_p4 = por %p3462_p3, %p3461_p2 }
  0x2b   :  { %p3464_p5 = pnand %p3463_p4, %p3457_p1 }
  0x2d   :  { %3467 = shalt.err (!%p3464_p5)
}
  0x2e   :  { %s3504_s0 = smov 4  }
  0x2f   :  { %61 = dma.hbm_to_vmem [thread:$0]  %s3622_s3, 8192, %s56_s1, [#allocation9], %s3498_s22, %s3498_s22, %s3504_s0  }
  0x30   :  { %3488 = dma.done.wait [#allocation3], 2048  }
  0x31   :  { %3489 = vsyncadd [#allocation3], 4294965248 }
  0x32   :  { %3490 = dma.done.wait [#allocation6], 36864  }
  0x33   :  { %3491 = vsyncadd [#allocation6], 4294930432 }
  0x34   :  { %3492 = dma.done.wait [#allocation9], 8192  }
  0x35   :  { %3493 = vsyncadd [#allocation9], 4294959104  ;;  %v157_v0 = vld [vmem:[#allocation7 + $0x1c0] sm:$0xff]  ;;  %v78_v54 = vld [vmem:[#allocation2 + $0x8] sm:$0xff] }
  0x36   :  { %v161_v1 = vld [vmem:[#allocation7 + $0x1e0] sm:$0xff]  ;;  %v82_v55 = vld [vmem:[#allocation2 + $0x28] sm:$0xff]  ;;  %v80_v59 = vld [vmem:[#allocation2 + $0x18] sm:$0xff] }
  0x37   :  { %v285_v2 = vld [vmem:[#allocation7 + $0x5c0] sm:$0xff]  ;;  %v2936_v3 = vcombine.high %v157_v0, %v161_v1  ;;  %v2935_v5 = vcombine.low %v157_v0, %v161_v1  ;;  %v3553_v58 = vpack.c.bf16 %v82_v55, %v78_v54  ;;  %v84_v60 = vld [vmem:[#allocation2 + $0x38] sm:$0xff] }
  0x38   :  { %v289_v4 = vld [vmem:[#allocation7 + $0x5e0] sm:$0xff]  ;;  %v3555_v63 = vpack.c.bf16 %v84_v60, %v80_v59 }
  0x39   :  { %v149_v6 = vld [vmem:[#allocation7 + $0x180] sm:$0xff]  ;;  %v3064_v8 = vcombine.high %v285_v2, %v289_v4  ;;  %v3063_v9 = vcombine.low %v285_v2, %v289_v4  ;;  %1669 = vmatprep.subr.bf16.mxu0 %v2936_v3  ;;  %1701 = vmatprep.mubr.bf16.mxu0 %v3553_v58 }
  0x3a   :  { %v153_v7 = vld [vmem:[#allocation7 + $0x1a0] sm:$0xff]  ;;  %1670 = vmatpush1.bf16.msra.mxu0 %v2935_v5  ;;  %1754 = vmatprep.mubr.bf16.mxu1 %v3555_v63 }
  0x3b   :  { %v2928_v10 = vcombine.high %v149_v6, %v153_v7  ;;  %v277_v11 = vld [vmem:[#allocation7 + $0x580] sm:$0xff]  ;;  %1722 = vmatprep.subr.bf16.mxu1 %v3064_v8  ;;  %v2927_v18 = vcombine.low %v149_v6, %v153_v7 }
  0x3c   :  { %v281_v12 = vld [vmem:[#allocation7 + $0x5a0] sm:$0xff]  ;;  %1723 = vmatpush1.bf16.msra.mxu1 %v3063_v9 }
  0x3d   :  { %v141_v13 = vld [vmem:[#allocation7 + $0x140] sm:$0xff]  ;;  %v3056_v14 = vcombine.high %v277_v11, %v281_v12  ;;  %1671 = vmatprep.subr.bf16.mxu0 %v2928_v10  ;;  %v3055_v19 = vcombine.low %v277_v11, %v281_v12 }
  0x3e   :  { %v145_v15 = vld [vmem:[#allocation7 + $0x160] sm:$0xff]  ;;  %1672 = vmatpush1.bf16.msra.mxu0 %v2927_v18 }
  0x3f   :  { %v269_v16 = vld [vmem:[#allocation7 + $0x540] sm:$0xff]  ;;  %v2920_v20 = vcombine.high %v141_v13, %v145_v15  ;;  %1724 = vmatprep.subr.bf16.mxu1 %v3056_v14  ;;  %v2919_v26 = vcombine.low %v141_v13, %v145_v15 }
  0x40   :  { %v273_v17 = vld [vmem:[#allocation7 + $0x560] sm:$0xff]  ;;  %1725 = vmatpush1.bf16.msra.mxu1 %v3055_v19 }
  0x41   :  { %v3048_v21 = vcombine.high %v269_v16, %v273_v17  ;;  %v133_v22 = vld [vmem:[#allocation7 + $0x100] sm:$0xff]  ;;  %1673 = vmatprep.subr.bf16.mxu0 %v2920_v20  ;;  %v3047_v27 = vcombine.low %v269_v16, %v273_v17 }
  0x42   :  { %v137_v23 = vld [vmem:[#allocation7 + $0x120] sm:$0xff]  ;;  %1674 = vmatpush1.bf16.msra.mxu0 %v2919_v26 }
  0x43   :  { %v261_v24 = vld [vmem:[#allocation7 + $0x500] sm:$0xff]  ;;  %v2912_v28 = vcombine.high %v133_v22, %v137_v23  ;;  %1726 = vmatprep.subr.bf16.mxu1 %v3048_v21  ;;  %v2911_v34 = vcombine.low %v133_v22, %v137_v23 }
  0x44   :  { %v265_v25 = vld [vmem:[#allocation7 + $0x520] sm:$0xff]  ;;  %1727 = vmatpush1.bf16.msra.mxu1 %v3047_v27 }
  0x45   :  { %v3040_v29 = vcombine.high %v261_v24, %v265_v25  ;;  %v125_v30 = vld [vmem:[#allocation7 + $0xc0] sm:$0xff]  ;;  %1675 = vmatprep.subr.bf16.mxu0 %v2912_v28  ;;  %v3039_v35 = vcombine.low %v261_v24, %v265_v25 }
  0x46   :  { %v129_v31 = vld [vmem:[#allocation7 + $0xe0] sm:$0xff]  ;;  %1676 = vmatpush1.bf16.msra.mxu0 %v2911_v34 }
  0x47   :  { %v253_v32 = vld [vmem:[#allocation7 + $0x4c0] sm:$0xff]  ;;  %v2904_v36 = vcombine.high %v125_v30, %v129_v31  ;;  %1728 = vmatprep.subr.bf16.mxu1 %v3040_v29  ;;  %v2903_v42 = vcombine.low %v125_v30, %v129_v31 }
  0x48   :  { %v257_v33 = vld [vmem:[#allocation7 + $0x4e0] sm:$0xff]  ;;  %1729 = vmatpush1.bf16.msra.mxu1 %v3039_v35 }
  0x49   :  { %v3032_v37 = vcombine.high %v253_v32, %v257_v33  ;;  %v117_v38 = vld [vmem:[#allocation7 + $0x80] sm:$0xff]  ;;  %1677 = vmatprep.subr.bf16.mxu0 %v2904_v36  ;;  %v3031_v43 = vcombine.low %v253_v32, %v257_v33 }
  0x4a   :  { %v121_v39 = vld [vmem:[#allocation7 + $0xa0] sm:$0xff]  ;;  %1678 = vmatpush1.bf16.msra.mxu0 %v2903_v42 }
  0x4b   :  { %v245_v40 = vld [vmem:[#allocation7 + $0x480] sm:$0xff]  ;;  %v2896_v44 = vcombine.high %v117_v38, %v121_v39  ;;  %1730 = vmatprep.subr.bf16.mxu1 %v3032_v37  ;;  %v2895_v50 = vcombine.low %v117_v38, %v121_v39 }
  0x4c   :  { %v249_v41 = vld [vmem:[#allocation7 + $0x4a0] sm:$0xff]  ;;  %1731 = vmatpush1.bf16.msra.mxu1 %v3031_v43 }
  0x4d   :  { %v3024_v45 = vcombine.high %v245_v40, %v249_v41  ;;  %v109_v46 = vld [vmem:[#allocation7 + $0x40] sm:$0xff]  ;;  %1679 = vmatprep.subr.bf16.mxu0 %v2896_v44  ;;  %v3023_v51 = vcombine.low %v245_v40, %v249_v41 }
  0x4e   :  { %v113_v47 = vld [vmem:[#allocation7 + $0x60] sm:$0xff]  ;;  %1680 = vmatpush1.bf16.msra.mxu0 %v2895_v50 }
  0x4f   :  { %v237_v48 = vld [vmem:[#allocation7 + $0x440] sm:$0xff]  ;;  %v2888_v52 = vcombine.high %v109_v46, %v113_v47  ;;  %1732 = vmatprep.subr.bf16.mxu1 %v3024_v45  ;;  %v2887_v0 = vcombine.low %v109_v46, %v113_v47 }
  0x50   :  { %v241_v49 = vld [vmem:[#allocation7 + $0x460] sm:$0xff]  ;;  %1733 = vmatpush1.bf16.msra.mxu1 %v3023_v51 }
  0x51   :  { %v101_v53 = vld [vmem:[#allocation7] sm:$0xff]  ;;  %v3016_v56 = vcombine.high %v237_v48, %v241_v49  ;;  %1681 = vmatprep.subr.bf16.mxu0 %v2888_v52  ;;  %v3015_v1 = vcombine.low %v237_v48, %v241_v49 }
  0x52   :  { %v105_v57 = vld [vmem:[#allocation7 + $0x20] sm:$0xff]  ;;  %1682 = vmatpush1.bf16.msra.mxu0 %v2887_v0 }
  0x53   :  { %v229_v61 = vld [vmem:[#allocation7 + $0x400] sm:$0xff]  ;;  %v2880_v2 = vcombine.high %v101_v53, %v105_v57  ;;  %1734 = vmatprep.subr.bf16.mxu1 %v3016_v56  ;;  %v2879_v8 = vcombine.low %v101_v53, %v105_v57 }
  0x54   :  { %v233_v62 = vld [vmem:[#allocation7 + $0x420] sm:$0xff]  ;;  %1735 = vmatpush1.bf16.msra.mxu1 %v3015_v1 }
  0x55   :  { %v3008_v3 = vcombine.high %v229_v61, %v233_v62  ;;  %v221_v4 = vld [vmem:[#allocation7 + $0x3c0] sm:$0xff]  ;;  %1683 = vmatprep.subr.bf16.mxu0 %v2880_v2  ;;  %v3007_v9 = vcombine.low %v229_v61, %v233_v62 }
  0x56   :  { %v225_v5 = vld [vmem:[#allocation7 + $0x3e0] sm:$0xff]  ;;  %1684 = vmatpush1.bf16.msra.mxu0 %v2879_v8  ;;  %v286_v8 = vld [vmem:[#allocation7 + $0x5c8] sm:$0xff] }
  0x57   :  { %v349_v6 = vld [vmem:[#allocation7 + $0x7c0] sm:$0xff]  ;;  %v3000_v10 = vcombine.high %v221_v4, %v225_v5  ;;  %1736 = vmatprep.subr.bf16.mxu1 %v3008_v3  ;;  %v2999_v16 = vcombine.low %v221_v4, %v225_v5 }
  0x58   :  { %v353_v7 = vld [vmem:[#allocation7 + $0x7e0] sm:$0xff]  ;;  %1737 = vmatpush1.bf16.msra.mxu1 %v3007_v9  ;;  %v290_v9 = vld [vmem:[#allocation7 + $0x5e8] sm:$0xff] }
  0x59   :  { %v3128_v11 = vcombine.high %v349_v6, %v353_v7  ;;  %v213_v12 = vld [vmem:[#allocation7 + $0x380] sm:$0xff]  ;;  %1685 = vmatprep.subr.bf16.mxu0 %v3000_v10  ;;  %v3127_v17 = vcombine.low %v349_v6, %v353_v7  ;;  %v158_v6 = vld [vmem:[#allocation7 + $0x1c8] sm:$0xff] }
  0x5a   :  { %v217_v13 = vld [vmem:[#allocation7 + $0x3a0] sm:$0xff]  ;;  %1686 = vmatpush2.bf16.msra.mxu0 %v2999_v16  ;;  %v162_v7 = vld [vmem:[#allocation7 + $0x1e8] sm:$0xff] }
  0x5b   :  { %v341_v14 = vld [vmem:[#allocation7 + $0x780] sm:$0xff]  ;;  %v2992_v18 = vcombine.high %v213_v12, %v217_v13  ;;  %1738 = vmatprep.subr.bf16.mxu1 %v3128_v11  ;;  %v2991_v24 = vcombine.low %v213_v12, %v217_v13  ;;  %v2938_v16 = vcombine.high %v158_v6, %v162_v7 }
  0x5c   :  { %v345_v15 = vld [vmem:[#allocation7 + $0x7a0] sm:$0xff]  ;;  %1739 = vmatpush2.bf16.msra.mxu1 %v3127_v17  ;;  %v3066_v17 = vcombine.high %v286_v8, %v290_v9 }
  0x5d   :  { %v3120_v19 = vcombine.high %v341_v14, %v345_v15  ;;  %v205_v20 = vld [vmem:[#allocation7 + $0x340] sm:$0xff]  ;;  %1687 = vmatprep.subr.bf16.mxu0 %v2992_v18  ;;  %v3119_v25 = vcombine.low %v341_v14, %v345_v15  ;;  %v79_v14 = vld [vmem:[#allocation2 + $0x10] sm:$0xff]  ;;  %v150_v18 = vld [vmem:[#allocation7 + $0x188] sm:$0xff] }
  0x5e   :  { %v209_v21 = vld [vmem:[#allocation7 + $0x360] sm:$0xff]  ;;  %1688 = vmatpush2.bf16.msra.mxu0 %v2991_v24  ;;  %v83_v15 = vld [vmem:[#allocation2 + $0x30] sm:$0xff]  ;;  %v90_v24 = vld [vmem:[#allocation2 + $0x68] sm:$0xff] }
  0x5f   :  { %v333_v22 = vld [vmem:[#allocation7 + $0x740] sm:$0xff]  ;;  %v2984_v26 = vcombine.high %v205_v20, %v209_v21  ;;  %1740 = vmatprep.subr.bf16.mxu1 %v3120_v19  ;;  %v2983_v32 = vcombine.low %v205_v20, %v209_v21  ;;  %v154_v19 = vld [vmem:[#allocation7 + $0x1a8] sm:$0xff] }
  0x60   :  { %v337_v23 = vld [vmem:[#allocation7 + $0x760] sm:$0xff]  ;;  %1741 = vmatpush2.bf16.msra.mxu1 %v3119_v25  ;;  %v278_v20 = vld [vmem:[#allocation7 + $0x588] sm:$0xff]  ;;  %v3561_v25 = vpack.c.bf16 %v83_v15, %v79_v14 }
  0x61   :  { %v3112_v27 = vcombine.high %v333_v22, %v337_v23  ;;  %v197_v28 = vld [vmem:[#allocation7 + $0x300] sm:$0xff]  ;;  %1689 = vmatprep.subr.bf16.mxu0 %v2984_v26  ;;  %v3111_v33 = vcombine.low %v333_v22, %v337_v23  ;;  %v282_v22 = vld [vmem:[#allocation7 + $0x5a8] sm:$0xff]  ;;  %v2937_v26 = vcombine.low %v158_v6, %v162_v7 }
  0x62   :  { %v201_v29 = vld [vmem:[#allocation7 + $0x320] sm:$0xff]  ;;  %1690 = vmatpush2.bf16.msra.mxu0 %v2983_v32  ;;  %v86_v23 = vld [vmem:[#allocation2 + $0x48] sm:$0xff] }
  0x63   :  { %v325_v30 = vld [vmem:[#allocation7 + $0x700] sm:$0xff]  ;;  %v2976_v34 = vcombine.high %v197_v28, %v201_v29  ;;  %1742 = vmatprep.subr.bf16.mxu1 %v3112_v27  ;;  %v2975_v40 = vcombine.low %v197_v28, %v201_v29  ;;  %v88_v27 = vld [vmem:[#allocation2 + $0x58] sm:$0xff]  ;;  %v3065_v29 = vcombine.low %v286_v8, %v290_v9  ;;  %v142_v32 = vld [vmem:[#allocation7 + $0x148] sm:$0xff] }
  0x64   :  { %v329_v31 = vld [vmem:[#allocation7 + $0x720] sm:$0xff]  ;;  %1743 = vmatpush2.bf16.msra.mxu1 %v3111_v33  ;;  %v92_v28 = vld [vmem:[#allocation2 + $0x78] sm:$0xff]  ;;  %v146_v33 = vld [vmem:[#allocation7 + $0x168] sm:$0xff] }
  0x65   :  { %v3104_v35 = vcombine.high %v325_v30, %v329_v31  ;;  %v189_v36 = vld [vmem:[#allocation7 + $0x2c0] sm:$0xff]  ;;  %1691 = vmatprep.subr.bf16.mxu0 %v2976_v34  ;;  %v3103_v41 = vcombine.low %v325_v30, %v329_v31  ;;  %v2930_v30 = vcombine.high %v150_v18, %v154_v19  ;;  %v3058_v31 = vcombine.high %v278_v20, %v282_v22  ;;  %v110_v9 = vld [vmem:[#allocation7 + $0x48] sm:$0xff] }
  0x66   :  { %v193_v37 = vld [vmem:[#allocation7 + $0x2e0] sm:$0xff]  ;;  %1692 = vmatpush2.bf16.msra.mxu0 %v2975_v40  ;;  %v3563_v34 = vpack.c.bf16 %v90_v24, %v86_v23 }
  0x67   :  { %v317_v38 = vld [vmem:[#allocation7 + $0x6c0] sm:$0xff]  ;;  %v2968_v42 = vcombine.high %v189_v36, %v193_v37  ;;  %1744 = vmatprep.subr.bf16.mxu1 %v3104_v35  ;;  %v2967_v48 = vcombine.low %v189_v36, %v193_v37  ;;  %v270_v35 = vld [vmem:[#allocation7 + $0x548] sm:$0xff]  ;;  %v3566_v37 = vpack.c.bf16 %v92_v28, %v88_v27 }
  0x68   :  { %v321_v39 = vld [vmem:[#allocation7 + $0x6e0] sm:$0xff]  ;;  %1745 = vmatpush2.bf16.msra.mxu1 %v3103_v41  ;;  %v274_v36 = vld [vmem:[#allocation7 + $0x568] sm:$0xff]  ;;  %v3057_v41 = vcombine.low %v278_v20, %v282_v22 }
  0x69   :  { %v3096_v43 = vcombine.high %v317_v38, %v321_v39  ;;  %v181_v44 = vld [vmem:[#allocation7 + $0x280] sm:$0xff]  ;;  %1693 = vmatprep.subr.bf16.mxu0 %v2968_v42  ;;  %v3095_v49 = vcombine.low %v317_v38, %v321_v39  ;;  %v2929_v38 = vcombine.low %v150_v18, %v154_v19  ;;  %v2922_v42 = vcombine.high %v142_v32, %v146_v33  ;;  %v106_v18 = vld [vmem:[#allocation7 + $0x28] sm:$0xff] }
  0x6a   :  { %v185_v45 = vld [vmem:[#allocation7 + $0x2a0] sm:$0xff]  ;;  %1694 = vmatpush2.bf16.msra.mxu0 %v2967_v48  ;;  %v262_v48 = vld [vmem:[#allocation7 + $0x508] sm:$0xff] }
  0x6b   :  { %v309_v46 = vld [vmem:[#allocation7 + $0x680] sm:$0xff]  ;;  %v2960_v50 = vcombine.high %v181_v44, %v185_v45  ;;  %1746 = vmatprep.subr.bf16.mxu1 %v3096_v43  ;;  %v2959_v56 = vcombine.low %v181_v44, %v185_v45  ;;  %v87_v43 = vld [vmem:[#allocation2 + $0x50] sm:$0xff]  ;;  %v3050_v45 = vcombine.high %v270_v35, %v274_v36  ;;  %v230_v19 = vld [vmem:[#allocation7 + $0x408] sm:$0xff] }
  0x6c   :  { %v313_v47 = vld [vmem:[#allocation7 + $0x6a0] sm:$0xff]  ;;  %1747 = vmatpush2.bf16.msra.mxu1 %v3095_v49  ;;  %v91_v44 = vld [vmem:[#allocation2 + $0x70] sm:$0xff]  ;;  %v266_v49 = vld [vmem:[#allocation7 + $0x528] sm:$0xff] }
  0x6d   :  { %v3088_v51 = vcombine.high %v309_v46, %v313_v47  ;;  %v173_v52 = vld [vmem:[#allocation7 + $0x240] sm:$0xff]  ;;  %1695 = vmatprep.subr.bf16.mxu0 %v2960_v50  ;;  %v3087_v57 = vcombine.low %v309_v46, %v313_v47  ;;  %v134_v46 = vld [vmem:[#allocation7 + $0x108] sm:$0xff] }
  0x6e   :  { %v177_v53 = vld [vmem:[#allocation7 + $0x260] sm:$0xff]  ;;  %1696 = vmatpush2.bf16.msra.mxu0 %v2959_v56  ;;  %v138_v47 = vld [vmem:[#allocation7 + $0x128] sm:$0xff] }
  0x6f   :  { %v301_v54 = vld [vmem:[#allocation7 + $0x640] sm:$0xff]  ;;  %v2952_v59 = vcombine.high %v173_v52, %v177_v53  ;;  %1748 = vmatprep.subr.bf16.mxu1 %v3088_v51  ;;  %v2951_v2 = vcombine.low %v173_v52, %v177_v53  ;;  %v2921_v51 = vcombine.low %v142_v32, %v146_v33  ;;  %v3573_v52 = vpack.c.bf16 %v91_v44, %v87_v43  ;;  %v130_v56 = vld [vmem:[#allocation7 + $0xe8] sm:$0xff] }
  0x70   :  { %v305_v55 = vld [vmem:[#allocation7 + $0x660] sm:$0xff]  ;;  %1749 = vmatpush2.bf16.msra.mxu1 %v3087_v57  ;;  %v3049_v53 = vcombine.low %v270_v35, %v274_v36  ;;  %v254_v57 = vld [vmem:[#allocation7 + $0x4c8] sm:$0xff] }
  0x71   :  { %v3080_v60 = vcombine.high %v301_v54, %v305_v55  ;;  %v165_v61 = vld [vmem:[#allocation7 + $0x200] sm:$0xff]  ;;  %1697 = vmatprep.subr.bf16.mxu0 %v2952_v59  ;;  %v3079_v3 = vcombine.low %v301_v54, %v305_v55  ;;  %v2914_v54 = vcombine.high %v134_v46, %v138_v47  ;;  %v126_v55 = vld [vmem:[#allocation7 + $0xc8] sm:$0xff]  ;;  %v3042_v59 = vcombine.high %v262_v48, %v266_v49 }
  0x72   :  { %v169_v62 = vld [vmem:[#allocation7 + $0x220] sm:$0xff]  ;;  %1698 = vmatpush2.bf16.msra.mxu0 %v2951_v2  ;;  %v122_v2 = vld [vmem:[#allocation7 + $0xa8] sm:$0xff]  ;;  %v2905_v6 = vcombine.low %v126_v55, %v130_v56 }
  0x73   :  { %v293_v0 = vld [vmem:[#allocation7 + $0x600] sm:$0xff]  ;;  %v2944_v4 = vcombine.high %v165_v61, %v169_v62  ;;  %1750 = vmatprep.subr.bf16.mxu1 %v3080_v60  ;;  %v2943_v10 = vcombine.low %v165_v61, %v169_v62  ;;  %v258_v60 = vld [vmem:[#allocation7 + $0x4e8] sm:$0xff]  ;;  %v2913_v61 = vcombine.low %v134_v46, %v138_v47  ;;  %v3041_v62 = vcombine.low %v262_v48, %v266_v49 }
  0x74   :  { %v297_v1 = vld [vmem:[#allocation7 + $0x620] sm:$0xff]  ;;  %1751 = vmatpush2.bf16.msra.mxu1 %v3079_v3  ;;  %v246_v3 = vld [vmem:[#allocation7 + $0x488] sm:$0xff]  ;;  %v3033_v7 = vcombine.low %v254_v57, %v258_v60 }
  0x75   :  { %v3072_v5 = vcombine.high %v293_v0, %v297_v1  ;;  %v77_v11 = vld [vmem:[#allocation2] sm:$0xff]  ;;  %1699 = vmatprep.subr.bf16.mxu0 %v2944_v4  ;;  %v3071_v13 = vcombine.low %v293_v0, %v297_v1  ;;  %v2906_v0 = vcombine.high %v126_v55, %v130_v56  ;;  %v118_v1 = vld [vmem:[#allocation7 + $0x88] sm:$0xff]  ;;  %v3034_v4 = vcombine.high %v254_v57, %v258_v60 }
  0x76   :  { %v81_v12 = vld [vmem:[#allocation2 + $0x20] sm:$0xff]  ;;  %1700 = vmatpush2.bf16.msra.mxu0 %v2943_v10  ;;  %v2898_v8 = vcombine.high %v118_v1, %v122_v2  ;;  %v114_v10 = vld [vmem:[#allocation7 + $0x68] sm:$0xff]  ;;  %v2897_v14 = vcombine.low %v118_v1, %v122_v2 }
  0x77   :  { %1752 = vmatprep.subr.bf16.mxu1 %v3072_v5  ;;  %v3559_v21 = vpack.c.bf16 %v81_v12, %v77_v11  ;;  %1775 = vmatprep.subr.bf16.mxu0 %v2938_v16  ;;  %v85_v39 = vld [vmem:[#allocation2 + $0x40] sm:$0xff]  ;;  %v250_v5 = vld [vmem:[#allocation7 + $0x4a8] sm:$0xff]  ;;  %v2890_v16 = vcombine.high %v110_v9, %v114_v10  ;;  %v2889_v23 = vcombine.low %v110_v9, %v114_v10 }
  0x78   :  { %1753 = vmatpush2.bf16.msra.mxu1 %v3071_v13  ;;  %v89_v40 = vld [vmem:[#allocation2 + $0x60] sm:$0xff]  ;;  %v238_v11 = vld [vmem:[#allocation7 + $0x448] sm:$0xff]  ;;  %v3026_v12 = vcombine.high %v246_v3, %v250_v5  ;;  %v3025_v15 = vcombine.low %v246_v3, %v250_v5 }
  0x79   :  { %1828 = vmatprep.subr.bf16.mxu1 %v3066_v17  ;;  %1702 = vmatmul.mubr.bf16.vlgmr.msra.gmra.mxu0 %v3559_v21  ;;  %v3570_v50 = vpack.c.bf16 %v89_v40, %v85_v39  ;;  %v242_v13 = vld [vmem:[#allocation7 + $0x468] sm:$0xff] }
  0x7a   :  { %1776 = vmatpush1.bf16.msra.mxu0 %v2937_v26  ;;  %1711 = vmatprep.mubr.bf16.mxu0 %v3563_v34  ;;  %v102_v17 = vld [vmem:[#allocation7 + $0x8] sm:$0xff]  ;;  %v3018_v20 = vcombine.high %v238_v11, %v242_v13  ;;  %v3017_v24 = vcombine.low %v238_v11, %v242_v13 }
  0x7b   :  { %1755 = vmatmul.mubr.bf16.vlgmr.msra.gmra.mxu1 %v3561_v25  ;;  %1777 = vmatprep.subr.bf16.mxu0 %v2930_v30  ;;  %v234_v22 = vld [vmem:[#allocation7 + $0x428] sm:$0xff]  ;;  %v2882_v26 = vcombine.high %v102_v17, %v106_v18  ;;  %v2881_v32 = vcombine.low %v102_v17, %v106_v18 }
  0x7c   :  { %1829 = vmatpush1.bf16.msra.mxu1 %v3065_v29  ;;  %1764 = vmatprep.mubr.bf16.mxu1 %v3566_v37  ;;  %v222_v27 = vld [vmem:[#allocation7 + $0x3c8] sm:$0xff]  ;;  %v3010_v30 = vcombine.high %v230_v19, %v234_v22  ;;  %v3009_v33 = vcombine.low %v230_v19, %v234_v22 }
  0x7d   :  { %1830 = vmatprep.subr.bf16.mxu1 %v3058_v31  ;;  %v226_v28 = vld [vmem:[#allocation7 + $0x3e8] sm:$0xff] }
  0x7e   :  { %1778 = vmatpush1.bf16.msra.mxu0 %v2929_v38  ;;  %v350_v29 = vld [vmem:[#allocation7 + $0x7c8] sm:$0xff]  ;;  %v3002_v35 = vcombine.high %v222_v27, %v226_v28 }
  0x7f   :  { %1779 = vmatprep.subr.bf16.mxu0 %v2922_v42  ;;  %v354_v31 = vld [vmem:[#allocation7 + $0x7e8] sm:$0xff]  ;;  %v3001_v42 = vcombine.low %v222_v27, %v226_v28 }
  0x80   :  { %1831 = vmatpush1.bf16.msra.mxu1 %v3057_v41  ;;  %v214_v36 = vld [vmem:[#allocation7 + $0x388] sm:$0xff]  ;;  %v3130_v40 = vcombine.high %v350_v29, %v354_v31  ;;  %v3129_v43 = vcombine.low %v350_v29, %v354_v31 }
  0x81   :  { %1832 = vmatprep.subr.bf16.mxu1 %v3050_v45  ;;  %1712 = vmatmul.mubr.bf16.gmra.mxu0 %v3570_v50  ;;  %v218_v38 = vld [vmem:[#allocation7 + $0x3a8] sm:$0xff] }
  0x82   :  { %1780 = vmatpush1.bf16.msra.mxu0 %v2921_v51  ;;  %1807 = vmatprep.mubr.bf16.mxu0 %v3553_v58  ;;  %v342_v39 = vld [vmem:[#allocation7 + $0x788] sm:$0xff]  ;;  %v2994_v44 = vcombine.high %v214_v36, %v218_v38  ;;  %v2993_v51 = vcombine.low %v214_v36, %v218_v38  ;;  %v159_v36 = vld [vmem:[#allocation7 + $0x1d0] sm:$0xff] }
  0x83   :  { %1765 = vmatmul.mubr.bf16.gmra.mxu1 %v3573_v52  ;;  %1781 = vmatprep.subr.bf16.mxu0 %v2914_v54  ;;  %v346_v41 = vld [vmem:[#allocation7 + $0x7a8] sm:$0xff]  ;;  %v163_v38 = vld [vmem:[#allocation7 + $0x1f0] sm:$0xff] }
  0x84   :  { %1833 = vmatpush1.bf16.msra.mxu1 %v3049_v53  ;;  %1860 = vmatprep.mubr.bf16.mxu1 %v3555_v63  ;;  %v206_v45 = vld [vmem:[#allocation7 + $0x348] sm:$0xff]  ;;  %v3122_v48 = vcombine.high %v342_v39, %v346_v41  ;;  %v3121_v53 = vcombine.low %v342_v39, %v346_v41  ;;  %v287_v39 = vld [vmem:[#allocation7 + $0x5d0] sm:$0xff] }
  0x85   :  { %1834 = vmatprep.subr.bf16.mxu1 %v3042_v59  ;;  %v210_v46 = vld [vmem:[#allocation7 + $0x368] sm:$0xff]  ;;  %v291_v41 = vld [vmem:[#allocation7 + $0x5f0] sm:$0xff] }
  0x86   :  { %1782 = vmatpush1.bf16.msra.mxu0 %v2913_v61  ;;  %v334_v47 = vld [vmem:[#allocation7 + $0x748] sm:$0xff]  ;;  %v2986_v54 = vcombine.high %v206_v45, %v210_v46  ;;  %v2985_v61 = vcombine.low %v206_v45, %v210_v46  ;;  %v151_v45 = vld [vmem:[#allocation7 + $0x190] sm:$0xff] }
  0x87   :  { %1783 = vmatprep.subr.bf16.mxu0 %v2906_v0  ;;  %v338_v49 = vld [vmem:[#allocation7 + $0x768] sm:$0xff]  ;;  %v155_v46 = vld [vmem:[#allocation7 + $0x1b0] sm:$0xff] }
  0x88   :  { %1835 = vmatpush1.bf16.msra.mxu1 %v3041_v62  ;;  %v198_v55 = vld [vmem:[#allocation7 + $0x308] sm:$0xff]  ;;  %v3114_v59 = vcombine.high %v334_v47, %v338_v49  ;;  %v3113_v62 = vcombine.low %v334_v47, %v338_v49  ;;  %v279_v47 = vld [vmem:[#allocation7 + $0x590] sm:$0xff] }
  0x89   :  { %1836 = vmatprep.subr.bf16.mxu1 %v3034_v4  ;;  %v202_v56 = vld [vmem:[#allocation7 + $0x328] sm:$0xff]  ;;  %v283_v49 = vld [vmem:[#allocation7 + $0x5b0] sm:$0xff] }
  0x8a   :  { %1784 = vmatpush1.bf16.msra.mxu0 %v2905_v6  ;;  %v326_v57 = vld [vmem:[#allocation7 + $0x708] sm:$0xff]  ;;  %v2978_v0 = vcombine.high %v198_v55, %v202_v56  ;;  %v2977_v6 = vcombine.low %v198_v55, %v202_v56  ;;  %v2932_v55 = vcombine.high %v151_v45, %v155_v46  ;;  %v147_v56 = vld [vmem:[#allocation7 + $0x170] sm:$0xff] }
  0x8b   :  { %1785 = vmatprep.subr.bf16.mxu0 %v2898_v8  ;;  %v330_v60 = vld [vmem:[#allocation7 + $0x728] sm:$0xff] }
  0x8c   :  { %1837 = vmatpush1.bf16.msra.mxu1 %v3033_v7  ;;  %v190_v1 = vld [vmem:[#allocation7 + $0x2c8] sm:$0xff]  ;;  %v3106_v4 = vcombine.high %v326_v57, %v330_v60  ;;  %v3105_v7 = vcombine.low %v326_v57, %v330_v60  ;;  %v3060_v57 = vcombine.high %v279_v47, %v283_v49  ;;  %v275_v60 = vld [vmem:[#allocation7 + $0x570] sm:$0xff] }
  0x8d   :  { %1838 = vmatprep.subr.bf16.mxu1 %v3026_v12  ;;  %v194_v2 = vld [vmem:[#allocation7 + $0x2e8] sm:$0xff] }
  0x8e   :  { %1786 = vmatpush1.bf16.msra.mxu0 %v2897_v14  ;;  %v318_v3 = vld [vmem:[#allocation7 + $0x6c8] sm:$0xff]  ;;  %v2970_v8 = vcombine.high %v190_v1, %v194_v2  ;;  %v2969_v14 = vcombine.low %v190_v1, %v194_v2  ;;  %v135_v2 = vld [vmem:[#allocation7 + $0x110] sm:$0xff] }
  0x8f   :  { %1787 = vmatprep.subr.bf16.mxu0 %v2890_v16  ;;  %v322_v5 = vld [vmem:[#allocation7 + $0x6e8] sm:$0xff] }
  0x90   :  { %1839 = vmatpush1.bf16.msra.mxu1 %v3025_v15  ;;  %v182_v9 = vld [vmem:[#allocation7 + $0x288] sm:$0xff]  ;;  %v3098_v12 = vcombine.high %v318_v3, %v322_v5  ;;  %v3097_v15 = vcombine.low %v318_v3, %v322_v5  ;;  %v139_v3 = vld [vmem:[#allocation7 + $0x130] sm:$0xff] }
  0x91   :  { %1840 = vmatprep.subr.bf16.mxu1 %v3018_v20  ;;  %v186_v10 = vld [vmem:[#allocation7 + $0x2a8] sm:$0xff]  ;;  %v267_v5 = vld [vmem:[#allocation7 + $0x530] sm:$0xff] }
  0x92   :  { %1788 = vmatpush1.bf16.msra.mxu0 %v2889_v23  ;;  %v310_v11 = vld [vmem:[#allocation7 + $0x688] sm:$0xff]  ;;  %v2962_v16 = vcombine.high %v182_v9, %v186_v10  ;;  %v2961_v23 = vcombine.low %v182_v9, %v186_v10  ;;  %v127_v10 = vld [vmem:[#allocation7 + $0xd0] sm:$0xff] }
  0x93   :  { %1789 = vmatprep.subr.bf16.mxu0 %v2882_v26  ;;  %v314_v13 = vld [vmem:[#allocation7 + $0x6a8] sm:$0xff] }
  0x94   :  { %1841 = vmatpush1.bf16.msra.mxu1 %v3017_v24  ;;  %v174_v17 = vld [vmem:[#allocation7 + $0x248] sm:$0xff]  ;;  %v3090_v20 = vcombine.high %v310_v11, %v314_v13  ;;  %v3089_v24 = vcombine.low %v310_v11, %v314_v13  ;;  %v131_v11 = vld [vmem:[#allocation7 + $0xf0] sm:$0xff] }
  0x95   :  { %1842 = vmatprep.subr.bf16.mxu1 %v3010_v30  ;;  %v178_v18 = vld [vmem:[#allocation7 + $0x268] sm:$0xff]  ;;  %v259_v13 = vld [vmem:[#allocation7 + $0x4f0] sm:$0xff] }
  0x96   :  { %1790 = vmatpush1.bf16.msra.mxu0 %v2881_v32  ;;  %v302_v19 = vld [vmem:[#allocation7 + $0x648] sm:$0xff]  ;;  %v2954_v26 = vcombine.high %v174_v17, %v178_v18  ;;  %v2953_v32 = vcombine.low %v174_v17, %v178_v18  ;;  %v119_v18 = vld [vmem:[#allocation7 + $0x90] sm:$0xff] }
  0x97   :  { %1791 = vmatprep.subr.bf16.mxu0 %v3002_v35  ;;  %v306_v22 = vld [vmem:[#allocation7 + $0x668] sm:$0xff] }
  0x98   :  { %1843 = vmatpush1.bf16.msra.mxu1 %v3009_v33  ;;  %v166_v27 = vld [vmem:[#allocation7 + $0x208] sm:$0xff]  ;;  %v3082_v30 = vcombine.high %v302_v19, %v306_v22  ;;  %v3081_v33 = vcombine.low %v302_v19, %v306_v22  ;;  %v123_v19 = vld [vmem:[#allocation7 + $0xb0] sm:$0xff] }
  0x99   :  { %1844 = vmatprep.subr.bf16.mxu1 %v3130_v40  ;;  %v170_v28 = vld [vmem:[#allocation7 + $0x228] sm:$0xff]  ;;  %v251_v22 = vld [vmem:[#allocation7 + $0x4b0] sm:$0xff] }
  0x9a   :  { %1792 = vmatpush2.bf16.msra.mxu0 %v3001_v42  ;;  %v294_v29 = vld [vmem:[#allocation7 + $0x608] sm:$0xff]  ;;  %v2946_v35 = vcombine.high %v166_v27, %v170_v28  ;;  %v2945_v42 = vcombine.low %v166_v27, %v170_v28  ;;  %v111_v28 = vld [vmem:[#allocation7 + $0x50] sm:$0xff] }
  0x9b   :  { %1793 = vmatprep.subr.bf16.mxu0 %v2994_v44  ;;  %v298_v31 = vld [vmem:[#allocation7 + $0x628] sm:$0xff]  ;;  %v2940_v44 = vcombine.high %v159_v36, %v163_v38 }
  0x9c   :  { %1845 = vmatpush2.bf16.msra.mxu1 %v3129_v43  ;;  %v3074_v40 = vcombine.high %v294_v29, %v298_v31  ;;  %v3073_v43 = vcombine.low %v294_v29, %v298_v31  ;;  %v115_v29 = vld [vmem:[#allocation7 + $0x70] sm:$0xff] }
  0x9d   :  { %1846 = vmatprep.subr.bf16.mxu1 %v3122_v48  ;;  %v3068_v48 = vcombine.high %v287_v39, %v291_v41  ;;  %v243_v31 = vld [vmem:[#allocation7 + $0x470] sm:$0xff] }
  0x9e   :  { %1794 = vmatpush2.bf16.msra.mxu0 %v2993_v51  ;;  %v2939_v51 = vcombine.low %v159_v36, %v163_v38  ;;  %v103_v38 = vld [vmem:[#allocation7 + $0x10] sm:$0xff] }
  0x9f   :  { %1795 = vmatprep.subr.bf16.mxu0 %v2986_v54  ;;  %v3067_v54 = vcombine.low %v287_v39, %v291_v41  ;;  %v107_v39 = vld [vmem:[#allocation7 + $0x30] sm:$0xff] }
  0xa0   :  { %1847 = vmatpush2.bf16.msra.mxu1 %v3121_v53  ;;  %v143_v53 = vld [vmem:[#allocation7 + $0x150] sm:$0xff] }
  0xa1   :  { %1848 = vmatprep.subr.bf16.mxu1 %v3114_v59  ;;  %v271_v59 = vld [vmem:[#allocation7 + $0x550] sm:$0xff] }
  0xa2   :  { %1796 = vmatpush2.bf16.msra.mxu0 %v2985_v61  ;;  %v2931_v61 = vcombine.low %v151_v45, %v155_v46  ;;  %v3052_v1 = vcombine.high %v271_v59, %v275_v60  ;;  %v235_v41 = vld [vmem:[#allocation7 + $0x430] sm:$0xff] }
  0xa3   :  { %1797 = vmatprep.subr.bf16.mxu0 %v2978_v0  ;;  %v2924_v0 = vcombine.high %v143_v53, %v147_v56  ;;  %v223_v46 = vld [vmem:[#allocation7 + $0x3d0] sm:$0xff] }
  0xa4   :  { %1849 = vmatpush2.bf16.msra.mxu1 %v3113_v62  ;;  %v3059_v62 = vcombine.low %v279_v47, %v283_v49  ;;  %v227_v47 = vld [vmem:[#allocation7 + $0x3f0] sm:$0xff] }
  0xa5   :  { %1850 = vmatprep.subr.bf16.mxu1 %v3106_v4  ;;  %v263_v4 = vld [vmem:[#allocation7 + $0x510] sm:$0xff] }
  0xa6   :  { %1798 = vmatpush2.bf16.msra.mxu0 %v2977_v6  ;;  %v2923_v6 = vcombine.low %v143_v53, %v147_v56  ;;  %v3044_v9 = vcombine.high %v263_v4, %v267_v5  ;;  %v355_v49 = vld [vmem:[#allocation7 + $0x7f0] sm:$0xff] }
  0xa7   :  { %1799 = vmatprep.subr.bf16.mxu0 %v2970_v8  ;;  %v2916_v8 = vcombine.high %v135_v2, %v139_v3  ;;  %v215_v56 = vld [vmem:[#allocation7 + $0x390] sm:$0xff] }
  0xa8   :  { %1851 = vmatpush2.bf16.msra.mxu1 %v3105_v7  ;;  %v3051_v7 = vcombine.low %v271_v59, %v275_v60  ;;  %v343_v59 = vld [vmem:[#allocation7 + $0x790] sm:$0xff] }
  0xa9   :  { %1852 = vmatprep.subr.bf16.mxu1 %v3098_v12  ;;  %v255_v12 = vld [vmem:[#allocation7 + $0x4d0] sm:$0xff] }
  0xaa   :  { %1800 = vmatpush2.bf16.msra.mxu0 %v2969_v14  ;;  %v2915_v14 = vcombine.low %v135_v2, %v139_v3  ;;  %v3036_v17 = vcombine.high %v255_v12, %v259_v13  ;;  %v347_v60 = vld [vmem:[#allocation7 + $0x7b0] sm:$0xff] }
  0xab   :  { %1801 = vmatprep.subr.bf16.mxu0 %v2962_v16  ;;  %v2908_v16 = vcombine.high %v127_v10, %v131_v11  ;;  %v207_v2 = vld [vmem:[#allocation7 + $0x350] sm:$0xff] }
  0xac   :  { %1853 = vmatpush2.bf16.msra.mxu1 %v3097_v15  ;;  %v3043_v15 = vcombine.low %v263_v4, %v267_v5  ;;  %v211_v3 = vld [vmem:[#allocation7 + $0x370] sm:$0xff] }
  0xad   :  { %1854 = vmatprep.subr.bf16.mxu1 %v3090_v20  ;;  %v247_v20 = vld [vmem:[#allocation7 + $0x490] sm:$0xff] }
  0xae   :  { %1802 = vmatpush2.bf16.msra.mxu0 %v2961_v23  ;;  %v2907_v23 = vcombine.low %v127_v10, %v131_v11  ;;  %v3028_v27 = vcombine.high %v247_v20, %v251_v22  ;;  %v335_v4 = vld [vmem:[#allocation7 + $0x750] sm:$0xff] }
  0xaf   :  { %1803 = vmatprep.subr.bf16.mxu0 %v2954_v26  ;;  %v2900_v26 = vcombine.high %v119_v18, %v123_v19  ;;  %v339_v5 = vld [vmem:[#allocation7 + $0x770] sm:$0xff] }
  0xb0   :  { %1855 = vmatpush2.bf16.msra.mxu1 %v3089_v24  ;;  %v3035_v24 = vcombine.low %v255_v12, %v259_v13  ;;  %v199_v10 = vld [vmem:[#allocation7 + $0x310] sm:$0xff] }
  0xb1   :  { %1856 = vmatprep.subr.bf16.mxu1 %v3082_v30  ;;  %v239_v30 = vld [vmem:[#allocation7 + $0x450] sm:$0xff] }
  0xb2   :  { %1804 = vmatpush2.bf16.msra.mxu0 %v2953_v32  ;;  %v2899_v32 = vcombine.low %v119_v18, %v123_v19  ;;  %v3020_v36 = vcombine.high %v239_v30, %v243_v31  ;;  %v203_v11 = vld [vmem:[#allocation7 + $0x330] sm:$0xff] }
  0xb3   :  { %1805 = vmatprep.subr.bf16.mxu0 %v2946_v35  ;;  %v2892_v35 = vcombine.high %v111_v28, %v115_v29  ;;  %v327_v12 = vld [vmem:[#allocation7 + $0x710] sm:$0xff] }
  0xb4   :  { %1857 = vmatpush2.bf16.msra.mxu1 %v3081_v33  ;;  %v3027_v33 = vcombine.low %v247_v20, %v251_v22  ;;  %v331_v13 = vld [vmem:[#allocation7 + $0x730] sm:$0xff] }
  0xb5   :  { %1858 = vmatprep.subr.bf16.mxu1 %v3074_v40  ;;  %v231_v40 = vld [vmem:[#allocation7 + $0x410] sm:$0xff] }
  0xb6   :  { %1806 = vmatpush2.bf16.msra.mxu0 %v2945_v42  ;;  %v2891_v42 = vcombine.low %v111_v28, %v115_v29  ;;  %v3012_v45 = vcombine.high %v231_v40, %v235_v41  ;;  %v3011_v53 = vcombine.low %v231_v40, %v235_v41  ;;  %v191_v18 = vld [vmem:[#allocation7 + $0x2d0] sm:$0xff] }
  0xb7   :  { %1881 = vmatprep.subr.bf16.mxu0 %v2940_v44  ;;  %v2884_v44 = vcombine.high %v103_v38, %v107_v39  ;;  %v195_v19 = vld [vmem:[#allocation7 + $0x2f0] sm:$0xff] }
  0xb8   :  { %1859 = vmatpush2.bf16.msra.mxu1 %v3073_v43  ;;  %v3019_v43 = vcombine.low %v239_v30, %v243_v31  ;;  %v319_v20 = vld [vmem:[#allocation7 + $0x6d0] sm:$0xff] }
  0xb9   :  { %1934 = vmatprep.subr.bf16.mxu1 %v3068_v48  ;;  %1808 = vmatmul.mubr.bf16.vlgmr.msra.gmra.mxu0 %v3559_v21  ;;  %v351_v48 = vld [vmem:[#allocation7 + $0x7d0] sm:$0xff] }
  0xba   :  { %1882 = vmatpush1.bf16.msra.mxu0 %v2939_v51  ;;  %1817 = vmatprep.mubr.bf16.mxu0 %v3563_v34  ;;  %v2883_v51 = vcombine.low %v103_v38, %v107_v39  ;;  %v323_v22 = vld [vmem:[#allocation7 + $0x6f0] sm:$0xff] }
  0xbb   :  { %1861 = vmatmul.mubr.bf16.vlgmr.msra.gmra.mxu1 %v3561_v25  ;;  %1883 = vmatprep.subr.bf16.mxu0 %v2932_v55  ;;  %v3132_v55 = vcombine.high %v351_v48, %v355_v49  ;;  %v183_v28 = vld [vmem:[#allocation7 + $0x290] sm:$0xff] }
  0xbc   :  { %1935 = vmatpush1.bf16.msra.mxu1 %v3067_v54  ;;  %1870 = vmatprep.mubr.bf16.mxu1 %v3566_v37  ;;  %v3004_v54 = vcombine.high %v223_v46, %v227_v47  ;;  %v187_v29 = vld [vmem:[#allocation7 + $0x2b0] sm:$0xff] }
  0xbd   :  { %1936 = vmatprep.subr.bf16.mxu1 %v3060_v57  ;;  %v219_v57 = vld [vmem:[#allocation7 + $0x3b0] sm:$0xff] }
  0xbe   :  { %1884 = vmatpush1.bf16.msra.mxu0 %v2931_v61  ;;  %v3003_v61 = vcombine.low %v223_v46, %v227_v47  ;;  %v311_v30 = vld [vmem:[#allocation7 + $0x690] sm:$0xff] }
  0xbf   :  { %1885 = vmatprep.subr.bf16.mxu0 %v2924_v0  ;;  %v2996_v0 = vcombine.high %v215_v56, %v219_v57  ;;  %v315_v31 = vld [vmem:[#allocation7 + $0x6b0] sm:$0xff] }
  0xc0   :  { %1937 = vmatpush1.bf16.msra.mxu1 %v3059_v62  ;;  %v3131_v62 = vcombine.low %v351_v48, %v355_v49  ;;  %v175_v38 = vld [vmem:[#allocation7 + $0x250] sm:$0xff] }
  0xc1   :  { %1938 = vmatprep.subr.bf16.mxu1 %v3052_v1  ;;  %1818 = vmatmul.mubr.bf16.gmra.mxu0 %v3570_v50  ;;  %v3124_v1 = vcombine.high %v343_v59, %v347_v60  ;;  %v179_v39 = vld [vmem:[#allocation7 + $0x270] sm:$0xff] }
  0xc2   :  { %1886 = vmatpush1.bf16.msra.mxu0 %v2923_v6  ;;  %1913 = vmatprep.mubr.bf16.mxu0 %v3553_v58  ;;  %v2995_v6 = vcombine.low %v215_v56, %v219_v57  ;;  %v303_v40 = vld [vmem:[#allocation7 + $0x650] sm:$0xff]  ;;  %v160_v56 = vld [vmem:[#allocation7 + $0x1d8] sm:$0xff] }
  0xc3   :  { %1871 = vmatmul.mubr.bf16.gmra.mxu1 %v3573_v52  ;;  %1887 = vmatprep.subr.bf16.mxu0 %v2916_v8  ;;  %v2988_v8 = vcombine.high %v207_v2, %v211_v3  ;;  %v307_v41 = vld [vmem:[#allocation7 + $0x670] sm:$0xff]  ;;  %v164_v57 = vld [vmem:[#allocation7 + $0x1f8] sm:$0xff] }
  0xc4   :  { %1939 = vmatpush1.bf16.msra.mxu1 %v3051_v7  ;;  %1966 = vmatprep.mubr.bf16.mxu1 %v3555_v63  ;;  %v3123_v7 = vcombine.low %v343_v59, %v347_v60  ;;  %v167_v46 = vld [vmem:[#allocation7 + $0x210] sm:$0xff]  ;;  %v288_v59 = vld [vmem:[#allocation7 + $0x5d8] sm:$0xff] }
  0xc5   :  { %1940 = vmatprep.subr.bf16.mxu1 %v3044_v9  ;;  %v3116_v9 = vcombine.high %v335_v4, %v339_v5  ;;  %v171_v47 = vld [vmem:[#allocation7 + $0x230] sm:$0xff]  ;;  %v292_v60 = vld [vmem:[#allocation7 + $0x5f8] sm:$0xff] }
  0xc6   :  { %1888 = vmatpush1.bf16.msra.mxu0 %v2915_v14  ;;  %v2987_v14 = vcombine.low %v207_v2, %v211_v3  ;;  %v295_v48 = vld [vmem:[#allocation7 + $0x610] sm:$0xff]  ;;  %v152_v2 = vld [vmem:[#allocation7 + $0x198] sm:$0xff] }
  0xc7   :  { %1889 = vmatprep.subr.bf16.mxu0 %v2908_v16  ;;  %v2980_v16 = vcombine.high %v199_v10, %v203_v11  ;;  %v299_v49 = vld [vmem:[#allocation7 + $0x630] sm:$0xff]  ;;  %v156_v3 = vld [vmem:[#allocation7 + $0x1b8] sm:$0xff] }
  0xc8   :  { %1941 = vmatpush1.bf16.msra.mxu1 %v3043_v15  ;;  %v3115_v15 = vcombine.low %v335_v4, %v339_v5  ;;  %v280_v4 = vld [vmem:[#allocation7 + $0x598] sm:$0xff] }
  0xc9   :  { %1942 = vmatprep.subr.bf16.mxu1 %v3036_v17  ;;  %v3108_v17 = vcombine.high %v327_v12, %v331_v13  ;;  %v284_v5 = vld [vmem:[#allocation7 + $0x5b8] sm:$0xff] }
  0xca   :  { %1890 = vmatpush1.bf16.msra.mxu0 %v2907_v23  ;;  %v2979_v23 = vcombine.low %v199_v10, %v203_v11  ;;  %v144_v10 = vld [vmem:[#allocation7 + $0x158] sm:$0xff] }
  0xcb   :  { %1891 = vmatprep.subr.bf16.mxu0 %v2900_v26  ;;  %v2972_v26 = vcombine.high %v191_v18, %v195_v19  ;;  %v148_v11 = vld [vmem:[#allocation7 + $0x178] sm:$0xff] }
  0xcc   :  { %1943 = vmatpush1.bf16.msra.mxu1 %v3035_v24  ;;  %v3107_v24 = vcombine.low %v327_v12, %v331_v13  ;;  %v272_v12 = vld [vmem:[#allocation7 + $0x558] sm:$0xff] }
  0xcd   :  { %1944 = vmatprep.subr.bf16.mxu1 %v3028_v27  ;;  %v3100_v27 = vcombine.high %v319_v20, %v323_v22  ;;  %v276_v13 = vld [vmem:[#allocation7 + $0x578] sm:$0xff] }
  0xce   :  { %1892 = vmatpush1.bf16.msra.mxu0 %v2899_v32  ;;  %v2971_v32 = vcombine.low %v191_v18, %v195_v19  ;;  %v136_v18 = vld [vmem:[#allocation7 + $0x118] sm:$0xff] }
  0xcf   :  { %1893 = vmatprep.subr.bf16.mxu0 %v2892_v35  ;;  %v2964_v35 = vcombine.high %v183_v28, %v187_v29  ;;  %v140_v19 = vld [vmem:[#allocation7 + $0x138] sm:$0xff] }
  0xd0   :  { %1945 = vmatpush1.bf16.msra.mxu1 %v3027_v33  ;;  %v3099_v33 = vcombine.low %v319_v20, %v323_v22  ;;  %v264_v20 = vld [vmem:[#allocation7 + $0x518] sm:$0xff] }
  0xd1   :  { %1946 = vmatprep.subr.bf16.mxu1 %v3020_v36  ;;  %v3092_v36 = vcombine.high %v311_v30, %v315_v31  ;;  %v268_v22 = vld [vmem:[#allocation7 + $0x538] sm:$0xff] }
  0xd2   :  { %1894 = vmatpush1.bf16.msra.mxu0 %v2891_v42  ;;  %v2963_v42 = vcombine.low %v183_v28, %v187_v29  ;;  %v128_v28 = vld [vmem:[#allocation7 + $0xd8] sm:$0xff] }
  0xd3   :  { %1895 = vmatprep.subr.bf16.mxu0 %v2884_v44  ;;  %v2956_v44 = vcombine.high %v175_v38, %v179_v39  ;;  %v132_v29 = vld [vmem:[#allocation7 + $0xf8] sm:$0xff] }
  0xd4   :  { %1947 = vmatpush1.bf16.msra.mxu1 %v3019_v43  ;;  %v3091_v43 = vcombine.low %v311_v30, %v315_v31  ;;  %v256_v30 = vld [vmem:[#allocation7 + $0x4d8] sm:$0xff] }
  0xd5   :  { %1948 = vmatprep.subr.bf16.mxu1 %v3012_v45  ;;  %v3084_v45 = vcombine.high %v303_v40, %v307_v41  ;;  %v260_v31 = vld [vmem:[#allocation7 + $0x4f8] sm:$0xff] }
  0xd6   :  { %1896 = vmatpush1.bf16.msra.mxu0 %v2883_v51  ;;  %v2955_v51 = vcombine.low %v175_v38, %v179_v39  ;;  %v120_v38 = vld [vmem:[#allocation7 + $0x98] sm:$0xff] }
  0xd7   :  { %1897 = vmatprep.subr.bf16.mxu0 %v3004_v54  ;;  %v2948_v54 = vcombine.high %v167_v46, %v171_v47  ;;  %v124_v39 = vld [vmem:[#allocation7 + $0xb8] sm:$0xff] }
  0xd8   :  { %1949 = vmatpush1.bf16.msra.mxu1 %v3011_v53  ;;  %v3083_v53 = vcombine.low %v303_v40, %v307_v41  ;;  %v248_v40 = vld [vmem:[#allocation7 + $0x498] sm:$0xff] }
  0xd9   :  { %1950 = vmatprep.subr.bf16.mxu1 %v3132_v55  ;;  %v3076_v55 = vcombine.high %v295_v48, %v299_v49  ;;  %v252_v41 = vld [vmem:[#allocation7 + $0x4b8] sm:$0xff] }
  0xda   :  { %1898 = vmatpush2.bf16.msra.mxu0 %v3003_v61  ;;  %v2947_v61 = vcombine.low %v167_v46, %v171_v47  ;;  %v112_v46 = vld [vmem:[#allocation7 + $0x58] sm:$0xff] }
  0xdb   :  { %1899 = vmatprep.subr.bf16.mxu0 %v2996_v0  ;;  %v2942_v0 = vcombine.high %v160_v56, %v164_v57  ;;  %v116_v47 = vld [vmem:[#allocation7 + $0x78] sm:$0xff] }
  0xdc   :  { %1951 = vmatpush2.bf16.msra.mxu1 %v3131_v62  ;;  %v3075_v62 = vcombine.low %v295_v48, %v299_v49  ;;  %v240_v48 = vld [vmem:[#allocation7 + $0x458] sm:$0xff] }
  0xdd   :  { %1952 = vmatprep.subr.bf16.mxu1 %v3124_v1  ;;  %v3070_v1 = vcombine.high %v288_v59, %v292_v60  ;;  %v244_v49 = vld [vmem:[#allocation7 + $0x478] sm:$0xff] }
  0xde   :  { %1900 = vmatpush2.bf16.msra.mxu0 %v2995_v6  ;;  %v2941_v6 = vcombine.low %v160_v56, %v164_v57  ;;  %v232_v56 = vld [vmem:[#allocation7 + $0x418] sm:$0xff] }
  0xdf   :  { %1901 = vmatprep.subr.bf16.mxu0 %v2988_v8  ;;  %v2934_v8 = vcombine.high %v152_v2, %v156_v3  ;;  %v236_v57 = vld [vmem:[#allocation7 + $0x438] sm:$0xff] }
  0xe0   :  { %1953 = vmatpush2.bf16.msra.mxu1 %v3123_v7  ;;  %v3069_v7 = vcombine.low %v288_v59, %v292_v60  ;;  %v2893_v59 = vcombine.low %v112_v46, %v116_v47  ;;  %v3021_v60 = vcombine.low %v240_v48, %v244_v49 }
  0xe1   :  { %1954 = vmatprep.subr.bf16.mxu1 %v3116_v9  ;;  %v3062_v9 = vcombine.high %v280_v4, %v284_v5 }
  0xe2   :  { %1902 = vmatpush2.bf16.msra.mxu0 %v2987_v14  ;;  %v2933_v14 = vcombine.low %v152_v2, %v156_v3  ;;  %v352_v2 = vld [vmem:[#allocation7 + $0x7d8] sm:$0xff] }
  0xe3   :  { %1903 = vmatprep.subr.bf16.mxu0 %v2980_v16  ;;  %v2926_v16 = vcombine.high %v144_v10, %v148_v11  ;;  %v356_v3 = vld [vmem:[#allocation7 + $0x7f8] sm:$0xff] }
  0xe4   :  { %1955 = vmatpush2.bf16.msra.mxu1 %v3115_v15  ;;  %v3061_v15 = vcombine.low %v280_v4, %v284_v5  ;;  %v3013_v5 = vcombine.low %v232_v56, %v236_v57 }
  0xe5   :  { %1956 = vmatprep.subr.bf16.mxu1 %v3108_v17  ;;  %v3054_v17 = vcombine.high %v272_v12, %v276_v13 }
  0xe6   :  { %1904 = vmatpush2.bf16.msra.mxu0 %v2979_v23  ;;  %v2925_v23 = vcombine.low %v144_v10, %v148_v11  ;;  %v344_v10 = vld [vmem:[#allocation7 + $0x798] sm:$0xff] }
  0xe7   :  { %1905 = vmatprep.subr.bf16.mxu0 %v2972_v26  ;;  %v2918_v26 = vcombine.high %v136_v18, %v140_v19  ;;  %v348_v11 = vld [vmem:[#allocation7 + $0x7b8] sm:$0xff] }
  0xe8   :  { %1957 = vmatpush2.bf16.msra.mxu1 %v3107_v24  ;;  %v3053_v24 = vcombine.low %v272_v12, %v276_v13  ;;  %v3133_v13 = vcombine.low %v352_v2, %v356_v3 }
  0xe9   :  { %1958 = vmatprep.subr.bf16.mxu1 %v3100_v27  ;;  %v3046_v27 = vcombine.high %v264_v20, %v268_v22 }
  0xea   :  { %1906 = vmatpush2.bf16.msra.mxu0 %v2971_v32  ;;  %v2917_v32 = vcombine.low %v136_v18, %v140_v19  ;;  %v336_v18 = vld [vmem:[#allocation7 + $0x758] sm:$0xff] }
  0xeb   :  { %1907 = vmatprep.subr.bf16.mxu0 %v2964_v35  ;;  %v2910_v35 = vcombine.high %v128_v28, %v132_v29  ;;  %v340_v19 = vld [vmem:[#allocation7 + $0x778] sm:$0xff] }
  0xec   :  { %1959 = vmatpush2.bf16.msra.mxu1 %v3099_v33  ;;  %v3045_v33 = vcombine.low %v264_v20, %v268_v22  ;;  %v3125_v22 = vcombine.low %v344_v10, %v348_v11 }
  0xed   :  { %1960 = vmatprep.subr.bf16.mxu1 %v3092_v36  ;;  %v3038_v36 = vcombine.high %v256_v30, %v260_v31 }
  0xee   :  { %1908 = vmatpush2.bf16.msra.mxu0 %v2963_v42  ;;  %v2909_v42 = vcombine.low %v128_v28, %v132_v29  ;;  %v328_v28 = vld [vmem:[#allocation7 + $0x718] sm:$0xff] }
  0xef   :  { %1909 = vmatprep.subr.bf16.mxu0 %v2956_v44  ;;  %v2902_v44 = vcombine.high %v120_v38, %v124_v39  ;;  %v332_v29 = vld [vmem:[#allocation7 + $0x738] sm:$0xff] }
  0xf0   :  { %1961 = vmatpush2.bf16.msra.mxu1 %v3091_v43  ;;  %v3037_v43 = vcombine.low %v256_v30, %v260_v31  ;;  %v3117_v31 = vcombine.low %v336_v18, %v340_v19 }
  0xf1   :  { %1962 = vmatprep.subr.bf16.mxu1 %v3084_v45  ;;  %v3030_v45 = vcombine.high %v248_v40, %v252_v41 }
  0xf2   :  { %1910 = vmatpush2.bf16.msra.mxu0 %v2955_v51  ;;  %v2901_v51 = vcombine.low %v120_v38, %v124_v39  ;;  %v320_v38 = vld [vmem:[#allocation7 + $0x6d8] sm:$0xff] }
  0xf3   :  { %1911 = vmatprep.subr.bf16.mxu0 %v2948_v54  ;;  %v104_v54 = vld [vmem:[#allocation7 + $0x18] sm:$0xff] }
  0xf4   :  { %1963 = vmatpush2.bf16.msra.mxu1 %v3083_v53  ;;  %v2894_v53 = vcombine.high %v112_v46, %v116_v47  ;;  %v324_v39 = vld [vmem:[#allocation7 + $0x6f8] sm:$0xff] }
  0xf5   :  { %1964 = vmatprep.subr.bf16.mxu1 %v3076_v55  ;;  %v108_v55 = vld [vmem:[#allocation7 + $0x38] sm:$0xff] }
  0xf6   :  { %1912 = vmatpush2.bf16.msra.mxu0 %v2947_v61  ;;  %v2886_v61 = vcombine.high %v104_v54, %v108_v55  ;;  %v2885_v4 = vcombine.low %v104_v54, %v108_v55  ;;  %v312_v46 = vld [vmem:[#allocation7 + $0x698] sm:$0xff] }
  0xf7   :  { %1987 = vmatprep.subr.bf16.mxu0 %v2942_v0  ;;  %v224_v0 = vld [vmem:[#allocation7 + $0x3d8] sm:$0xff] }
  0xf8   :  { %1965 = vmatpush2.bf16.msra.mxu1 %v3075_v62  ;;  %v3014_v62 = vcombine.high %v232_v56, %v236_v57  ;;  %v316_v47 = vld [vmem:[#allocation7 + $0x6b8] sm:$0xff] }
  0xf9   :  { %2040 = vmatprep.subr.bf16.mxu1 %v3070_v1  ;;  %1914 = vmatmul.mubr.bf16.vlgmr.msra.gmra.mxu0 %v3559_v21  ;;  %v228_v1 = vld [vmem:[#allocation7 + $0x3f8] sm:$0xff]  ;;  %v3093_v57 = vcombine.low %v312_v46, %v316_v47 }
  0xfa   :  { %1988 = vmatpush1.bf16.msra.mxu0 %v2941_v6  ;;  %1923 = vmatprep.mubr.bf16.mxu0 %v3563_v34  ;;  %v3006_v6 = vcombine.high %v224_v0, %v228_v1  ;;  %v3005_v12 = vcombine.low %v224_v0, %v228_v1  ;;  %v304_v54 = vld [vmem:[#allocation7 + $0x658] sm:$0xff] }
  0xfb   :  { %1967 = vmatmul.mubr.bf16.vlgmr.msra.gmra.mxu1 %v3561_v25  ;;  %1989 = vmatprep.subr.bf16.mxu0 %v2934_v8  ;;  %v216_v8 = vld [vmem:[#allocation7 + $0x398] sm:$0xff] }
  0xfc   :  { %2041 = vmatpush1.bf16.msra.mxu1 %v3069_v7  ;;  %1976 = vmatprep.mubr.bf16.mxu1 %v3566_v37  ;;  %v3134_v7 = vcombine.high %v352_v2, %v356_v3  ;;  %v308_v55 = vld [vmem:[#allocation7 + $0x678] sm:$0xff] }
  0xfd   :  { %2042 = vmatprep.subr.bf16.mxu1 %v3062_v9  ;;  %v220_v9 = vld [vmem:[#allocation7 + $0x3b8] sm:$0xff]  ;;  %v3085_v3 = vcombine.low %v304_v54, %v308_v55 }
  0xfe   :  { %1990 = vmatpush1.bf16.msra.mxu0 %v2933_v14  ;;  %v2998_v14 = vcombine.high %v216_v8, %v220_v9  ;;  %v2997_v20 = vcombine.low %v216_v8, %v220_v9  ;;  %v296_v0 = vld [vmem:[#allocation7 + $0x618] sm:$0xff] }
  0xff   :  { %1991 = vmatprep.subr.bf16.mxu0 %v2926_v16  ;;  %v208_v16 = vld [vmem:[#allocation7 + $0x358] sm:$0xff] }
 0x100   :  { %2043 = vmatpush1.bf16.msra.mxu1 %v3061_v15  ;;  %v3126_v15 = vcombine.high %v344_v10, %v348_v11  ;;  %v300_v1 = vld [vmem:[#allocation7 + $0x638] sm:$0xff]  ;;  %v3326_v11 = vld [vmem:[#allocation8 + $0x70] sm:$0xff]  }
 0x101   :  { %2044 = vmatprep.subr.bf16.mxu1 %v3054_v17  ;;  %1924 = vmatmul.mubr.bf16.gmra.mxu0 %v3570_v50  ;;  %v212_v17 = vld [vmem:[#allocation7 + $0x378] sm:$0xff] }
 0x102   :  { %1992 = vmatpush1.bf16.msra.mxu0 %v2925_v23  ;;  %2019 = vmatprep.mubr.bf16.mxu0 %v3553_v58  ;;  %v3029_v58 = vcombine.low %v248_v40, %v252_v41  ;;  %v2990_v23 = vcombine.high %v208_v16, %v212_v17  ;;  %v2989_v30 = vcombine.low %v208_v16, %v212_v17  ;;  %v3324_v8 = vld [vmem:[#allocation8 + $0x78] sm:$0xff]   ;;  %v3327_v17 = vld [vmem:[#allocation8 + $0x30] sm:$0xff]  }
 0x103   :  { %1977 = vmatmul.mubr.bf16.gmra.mxu1 %v3573_v52  ;;  %1993 = vmatprep.subr.bf16.mxu0 %v2918_v26  ;;  %v200_v26 = vld [vmem:[#allocation7 + $0x318] sm:$0xff]  ;;  %v3109_v41 = vcombine.low %v328_v28, %v332_v29 }
 0x104   :  { %2045 = vmatpush1.bf16.msra.mxu1 %v3053_v24  ;;  %2072 = vmatprep.mubr.bf16.mxu1 %v3555_v63  ;;  %v3022_v63 = vcombine.high %v240_v48, %v244_v49  ;;  %v3118_v24 = vcombine.high %v336_v18, %v340_v19  ;;  %v3101_v49 = vcombine.low %v320_v38, %v324_v39  ;;  %v3340_v9 = vld [vmem:[#allocation8 + $0xf8] sm:$0xff]   ;;  %v3328_v19 = vld [vmem:[#allocation8 + $0x68] sm:$0xff]  }
 0x105   :  { %2046 = vmatprep.subr.bf16.mxu1 %v3046_v27  ;;  %v204_v27 = vld [vmem:[#allocation7 + $0x338] sm:$0xff] }
 0x106   :  { %1994 = vmatpush1.bf16.msra.mxu0 %v2917_v32  ;;  %v2982_v32 = vcombine.high %v200_v26, %v204_v27  ;;  %v2981_v40 = vcombine.low %v200_v26, %v204_v27  ;;  %v3325_v10 = vld [vmem:[#allocation8 + $0x38] sm:$0xff]   ;;  %v3344_v26 = vld [vmem:[#allocation8 + $0xe8] sm:$0xff]  }
 0x107   :  { %1995 = vmatprep.subr.bf16.mxu0 %v2910_v35  ;;  %v192_v35 = vld [vmem:[#allocation7 + $0x2d8] sm:$0xff] }
 0x108   :  { %2047 = vmatpush1.bf16.msra.mxu1 %v3045_v33  ;;  %v3110_v33 = vcombine.high %v328_v28, %v332_v29  ;;  %v3330_v29 = vld [vmem:[#allocation8 + $0x60] sm:$0xff]  }
 0x109   :  { %2048 = vmatprep.subr.bf16.mxu1 %v3038_v36  ;;  %v196_v36 = vld [vmem:[#allocation7 + $0x2f8] sm:$0xff] }
 0x10a   :  { %1996 = vmatpush1.bf16.msra.mxu0 %v2909_v42  ;;  %v2974_v42 = vcombine.high %v192_v35, %v196_v36  ;;  %v2973_v48 = vcombine.low %v192_v35, %v196_v36  ;;  %v3331_v36 = vld [vmem:[#allocation8 + $0x20] sm:$0xff]  }
 0x10b   :  { %1997 = vmatprep.subr.bf16.mxu0 %v2902_v44  ;;  %v184_v44 = vld [vmem:[#allocation7 + $0x298] sm:$0xff] }
 0x10c   :  { %2049 = vmatpush1.bf16.msra.mxu1 %v3037_v43  ;;  %v3102_v43 = vcombine.high %v320_v38, %v324_v39  ;;  %v3332_v39 = vld [vmem:[#allocation8 + $0x58] sm:$0xff]  }
 0x10d   :  { %2050 = vmatprep.subr.bf16.mxu1 %v3030_v45  ;;  %v188_v45 = vld [vmem:[#allocation7 + $0x2b8] sm:$0xff] }
 0x10e   :  { %1998 = vmatpush1.bf16.msra.mxu0 %v2901_v51  ;;  %v2966_v51 = vcombine.high %v184_v44, %v188_v45  ;;  %v2965_v56 = vcombine.low %v184_v44, %v188_v45  ;;  %v3347_v44 = vld [vmem:[#allocation8 + $0xa0] sm:$0xff]  }
 0x10f   :  { %1999 = vmatprep.subr.bf16.mxu0 %v2894_v53  ;;  %v176_v53 = vld [vmem:[#allocation7 + $0x258] sm:$0xff] }
 0x110   :  { %2051 = vmatpush1.bf16.msra.mxu1 %v3029_v58  ;;  %v3094_v58 = vcombine.high %v312_v46, %v316_v47  ;;  %v3333_v47 = vld [vmem:[#allocation8 + $0x18] sm:$0xff]  }
 0x111   :  { %2052 = vmatprep.subr.bf16.mxu1 %v3022_v63  ;;  %v180_v63 = vld [vmem:[#allocation7 + $0x278] sm:$0xff] }
 0x112   :  { %2000 = vmatpush1.bf16.msra.mxu0 %v2893_v59  ;;  %v2958_v59 = vcombine.high %v176_v53, %v180_v63  ;;  %v2957_v2 = vcombine.low %v176_v53, %v180_v63  ;;  %v365_v53 = vld [vmem:[#allocation5 + $0x40] sm:$0xff]  ;;  %v3349_v63 = vld [vmem:[#allocation8 + $0x98] sm:$0xff]  }
 0x113   :  { %2001 = vmatprep.subr.bf16.mxu0 %v2886_v61  ;;  %v168_v61 = vld [vmem:[#allocation7 + $0x218] sm:$0xff] }
 0x114   :  { %2053 = vmatpush1.bf16.msra.mxu1 %v3021_v60  ;;  %v3086_v60 = vcombine.high %v304_v54, %v308_v55  ;;  %v3350_v54 = vld [vmem:[#allocation8 + $0xd0] sm:$0xff]   ;;  %v357_v55 = vld [vmem:[#allocation5] sm:$0xff] }
 0x115   :  { %2054 = vmatprep.subr.bf16.mxu1 %v3014_v62  ;;  %v172_v62 = vld [vmem:[#allocation7 + $0x238] sm:$0xff] }
 0x116   :  { %2002 = vmatpush1.bf16.msra.mxu0 %v2885_v4  ;;  %v2950_v4 = vcombine.high %v168_v61, %v172_v62 }
 0x117   :  { %2003 = vmatprep.subr.bf16.mxu0 %v3006_v6  ;;  %v2949_v6 = vcombine.low %v168_v61, %v172_v62  ;;  %v3336_v61 = vld [vmem:[#allocation8 + $0x48] sm:$0xff]  }
 0x118   :  { %2055 = vmatpush1.bf16.msra.mxu1 %v3013_v5  ;;  %v3078_v5 = vcombine.high %v296_v0, %v300_v1 }
 0x119   :  { %2056 = vmatprep.subr.bf16.mxu1 %v3134_v7  ;;  %v3077_v7 = vcombine.low %v296_v0, %v300_v1  ;;  %v3351_v0 = vld [vmem:[#allocation8 + $0x90] sm:$0xff]  }
 0x11a   :  { %2004 = vmatpush2.bf16.msra.mxu0 %v3005_v12  ;;  %v3341_v12 = vld [vmem:[#allocation8 + $0xb8] sm:$0xff]  }
 0x11b   :  { %2005 = vmatprep.subr.bf16.mxu0 %v2998_v14  ;;  %v358_v14 = vld [vmem:[#allocation5 + $0x8] sm:$0xff] }
 0x11c   :  { %2057 = vmatpush2.bf16.msra.mxu1 %v3133_v13 }
 0x11d   :  { %2058 = vmatprep.subr.bf16.mxu1 %v3126_v15  ;;  %v3342_v15 = vld [vmem:[#allocation8 + $0xf0] sm:$0xff]  }
 0x11e   :  { %2006 = vmatpush2.bf16.msra.mxu0 %v2997_v20 }
 0x11f   :  { %2007 = vmatprep.subr.bf16.mxu0 %v2990_v23  ;;  %v3343_v23 = vld [vmem:[#allocation8 + $0xb0] sm:$0xff]  }
 0x120   :  { %2059 = vmatpush2.bf16.msra.mxu1 %v3125_v22 }
 0x121   :  { %2060 = vmatprep.subr.bf16.mxu1 %v3118_v24  ;;  %v366_v24 = vld [vmem:[#allocation5 + $0x48] sm:$0xff] }
 0x122   :  { %2008 = vmatpush2.bf16.msra.mxu0 %v2989_v30 }
 0x123   :  { %2009 = vmatprep.subr.bf16.mxu0 %v2982_v32  ;;  %v3345_v32 = vld [vmem:[#allocation8 + $0xa8] sm:$0xff]  }
 0x124   :  { %2061 = vmatpush2.bf16.msra.mxu1 %v3117_v31 }
 0x125   :  { %2062 = vmatprep.subr.bf16.mxu1 %v3110_v33  ;;  %v3346_v33 = vld [vmem:[#allocation8 + $0xe0] sm:$0xff]  }
 0x126   :  { %2010 = vmatpush2.bf16.msra.mxu0 %v2981_v40 }
 0x127   :  { %2011 = vmatprep.subr.bf16.mxu0 %v2974_v42 }
 0x128   :  { %2063 = vmatpush2.bf16.msra.mxu1 %v3109_v41 }
 0x129   :  { %2064 = vmatprep.subr.bf16.mxu1 %v3102_v43 }
 0x12a   :  { %2012 = vmatpush2.bf16.msra.mxu0 %v2973_v48  ;;  %v374_v48 = vld [vmem:[#allocation5 + $0x88] sm:$0xff] }
 0x12b   :  { %2013 = vmatprep.subr.bf16.mxu0 %v2966_v51 }
 0x12c   :  { %2065 = vmatpush2.bf16.msra.mxu1 %v3101_v49  ;;  %v382_v49 = vld [vmem:[#allocation5 + $0xc8] sm:$0xff] }
 0x12d   :  { %2066 = vmatprep.subr.bf16.mxu1 %v3094_v58 }
 0x12e   :  { %2014 = vmatpush2.bf16.msra.mxu0 %v2965_v56  ;;  %v3335_v56 = vld [vmem:[#allocation8 + $0x10] sm:$0xff]  }
 0x12f   :  { %2015 = vmatprep.subr.bf16.mxu0 %v2958_v59 }
 0x130   :  { %2067 = vmatpush2.bf16.msra.mxu1 %v3093_v57 }
 0x131   :  { %2068 = vmatprep.subr.bf16.mxu1 %v3086_v60 }
 0x132   :  { %2016 = vmatpush2.bf16.msra.mxu0 %v2957_v2  ;;  %v3352_v2 = vld [vmem:[#allocation8 + $0xc8] sm:$0xff]  }
 0x133   :  { %2017 = vmatprep.subr.bf16.mxu0 %v2950_v4  ;;  %v373_v4 = vld [vmem:[#allocation5 + $0x80] sm:$0xff] }
 0x134   :  { %2069 = vmatpush2.bf16.msra.mxu1 %v3085_v3  ;;  %v3337_v3 = vld [vmem:[#allocation8 + $0x8] sm:$0xff]  }
 0x135   :  { %2070 = vmatprep.subr.bf16.mxu1 %v3078_v5  ;;  %v381_v5 = vld [vmem:[#allocation5 + $0xc0] sm:$0xff] }
 0x136   :  { %2018 = vmatpush2.bf16.msra.mxu0 %v2949_v6 }
 0x137   :  { %3200 = vmatprep.subr.bf16.mxu0 %v3324_v8 }
 0x138   :  { %2071 = vmatpush2.bf16.msra.mxu1 %v3077_v7 }
 0x139   :  { %3228 = vmatprep.subr.bf16.mxu1 %v3340_v9  ;;  %v3595_v13 = vpop.f32.mrf.mxu0  ;;  %2020 = vmatmul.mubr.bf16.vlgmr.msra.gmra.mxu0 %v3559_v21  ;;  %v3338_v9 = vld [vmem:[#allocation8 + $0x40] sm:$0xff]  }
 0x13a   :  { %3201 = vmatpush3.bf16.msra.mxu0 %v3325_v10  ;;  %2029 = vmatprep.mubr.bf16.mxu0 %v3563_v34  ;;  %v1704_v1 = vadd.f32 %v3595_v13, %v357_v55  ;;  %v3353_v10 = vld [vmem:[#allocation8 + $0x88] sm:$0xff]   ;;  %v3354_v13 = vld [vmem:[#allocation8 + $0xc0] sm:$0xff]  }
 0x13b   :  { %v3598_v16 = vpop.f32.mrf.mxu1  ;;  %2073 = vmatmul.mubr.bf16.vlgmr.msra.gmra.mxu1 %v3561_v25  ;;  %v1705_v18 = vpop.f32.mrf.mxu0  ;;  %3202 = vmatprep.subr.bf16.mxu0 %v3326_v11  ;;  %v3329_v25 = vld [vmem:[#allocation8 + $0x28] sm:$0xff]  }
 0x13c   :  { %v1706_v20 = vadd.f32 %v1705_v18, %v358_v14  ;;  %2082 = vmatprep.mubr.bf16.mxu1 %v3566_v37  ;;  %3229 = vmatpush3.bf16.msra.mxu1 %v3341_v12  ;;  %v1757_v11 = vadd.f32 %v3598_v16, %v1704_v1 }
 0x13d   :  { %v1758_v22 = vpop.f32.mrf.mxu1  ;;  %v1707_v21 = vpop.f32.mrf.mxu0  ;;  %3230 = vmatprep.subr.bf16.mxu1 %v3342_v15  ;;  %v3339_v15 = vld [vmem:[#allocation8] sm:$0xff]  }
 0x13e   :  { %3203 = vmatpush3.bf16.msra.mxu0 %v3327_v17  ;;  %v1759_v30 = vadd.f32 %v1758_v22, %v1706_v20  ;;  %v1708_v60 = vadd.f32 %v1707_v21, %v365_v53  ;;  %v3356_v20 = vld [vmem:[#allocation8 + $0x178] sm:$0xff]   ;;  %v3355_v22 = vld [vmem:[#allocation8 + $0x80] sm:$0xff]  }
 0x13f   :  { %v3603_v27 = vpop.f32.mrf.mxu1  ;;  %v1709_v28 = vpop.f32.mrf.mxu0  ;;  %3204 = vmatprep.subr.bf16.mxu0 %v3328_v19 }
 0x140   :  { %v1710_v34 = vadd.f32 %v1709_v28, %v366_v24  ;;  %3231 = vmatpush3.bf16.msra.mxu1 %v3343_v23  ;;  %v2094_v41 = vmax.f32 %v1759_v30, 0.0  ;;  %v1761_v8 = vadd.f32 %v3603_v27, %v1708_v60  ;;  %v2093_v23 = vmax.f32 %v1757_v11, 0.0  ;;  %v3357_v27 = vld [vmem:[#allocation8 + $0x138] sm:$0xff]   ;;  %v3358_v28 = vld [vmem:[#allocation8 + $0x170] sm:$0xff]  }
 0x141   :  { %v1762_v31 = vpop.f32.mrf.mxu1  ;;  %2030 = vmatmul.mubr.bf16.gmra.mxu0 %v3570_v50  ;;  %v1713_v37 = vpop.f32.mrf.mxu0  ;;  %3232 = vmatprep.subr.bf16.mxu1 %v3344_v26  ;;  %v3348_v50 = vld [vmem:[#allocation8 + $0xd8] sm:$0xff]  }
 0x142   :  { %v1763_v35 = vadd.f32 %v1762_v31, %v1710_v34  ;;  %3205 = vmatpush3.bf16.msra.mxu0 %v3329_v25  ;;  %v1714_v12 = vadd.f32 %v1713_v37, %v373_v4  ;;  %v2101_v19 = vmax.f32 %v1761_v8, 0.0  ;;  %v3372_v26 = vld [vmem:[#allocation8 + $0x1f8] sm:$0xff]   ;;  %v3359_v34 = vld [vmem:[#allocation8 + $0x130] sm:$0xff]   ;;  %v3360_v31 = vld [vmem:[#allocation8 + $0x168] sm:$0xff]  }
 0x143   :  { %2083 = vmatmul.mubr.bf16.gmra.mxu1 %v3573_v52  ;;  %v3607_v38 = vpop.f32.mrf.mxu1  ;;  %3206 = vmatprep.subr.bf16.mxu0 %v3330_v29  ;;  %v1715_v40 = vpop.f32.mrf.mxu0  ;;  %v3334_v52 = vld [vmem:[#allocation8 + $0x50] sm:$0xff]   ;;  %v3361_v37 = vld [vmem:[#allocation8 + $0x128] sm:$0xff]  }
 0x144   :  { %v2102_v42 = vmax.f32 %v1763_v35, 0.0  ;;  %3233 = vmatpush3.bf16.msra.mxu1 %v3345_v32  ;;  %v1716_v57 = vadd.f32 %v1715_v40, %v374_v48  ;;  %v1767_v21 = vadd.f32 %v3607_v38, %v1714_v12  ;;  %v2125_v25 = vpack.c.bf16 %v2101_v19, %v2093_v23  ;;  %v3363_v35 = vld [vmem:[#allocation8 + $0x120] sm:$0xff]   ;;  %v3365_v38 = vld [vmem:[#allocation8 + $0x118] sm:$0xff]   ;;  %v3367_v40 = vld [vmem:[#allocation8 + $0x110] sm:$0xff]  }
 0x145   :  { %v1768_v43 = vpop.f32.mrf.mxu1  ;;  %v1717_v45 = vpop.f32.mrf.mxu0  ;;  %3234 = vmatprep.subr.bf16.mxu1 %v3346_v33  ;;  %v3362_v33 = vld [vmem:[#allocation8 + $0x160] sm:$0xff]   ;;  %v367_v48 = vld [vmem:[#allocation5 + $0x50] sm:$0xff]  ;;  %v3373_v23 = vld [vmem:[#allocation8 + $0x1b8] sm:$0xff]  }
 0x146   :  { %v2126_v46 = vpack.c.bf16 %v2102_v42, %v2094_v41  ;;  %3207 = vmatpush3.bf16.msra.mxu0 %v3331_v36  ;;  %v1769_v6 = vadd.f32 %v1768_v43, %v1716_v57  ;;  %v1718_v14 = vadd.f32 %v1717_v45, %v381_v5  ;;  %v2109_v29 = vmax.f32 %v1767_v21, 0.0  ;;  %v3364_v36 = vld [vmem:[#allocation8 + $0x158] sm:$0xff]   ;;  %v3368_v41 = vld [vmem:[#allocation8 + $0x148] sm:$0xff]   ;;  %v3370_v43 = vld [vmem:[#allocation8 + $0x140] sm:$0xff]  }
 0x147   :  { %3208 = vmatprep.subr.bf16.mxu0 %v3332_v39  ;;  %v1719_v51 = vpop.f32.mrf.mxu0  ;;  %v1770_v58 = vpop.f32.mrf.mxu1  ;;  %v3366_v39 = vld [vmem:[#allocation8 + $0x150] sm:$0xff]   ;;  %v3369_v42 = vld [vmem:[#allocation8 + $0x108] sm:$0xff]  }
 0x148   :  { %2692 = vmatprep.mubr.bf16.mxu0 %v2126_v46  ;;  %3235 = vmatpush3.bf16.msra.mxu1 %v3347_v44  ;;  %v1720_v59 = vadd.f32 %v1719_v51, %v382_v49  ;;  %v2110_v17 = vmax.f32 %v1769_v6, 0.0  ;;  %v1771_v24 = vadd.f32 %v1770_v58, %v1718_v14  ;;  %v3371_v44 = vld [vmem:[#allocation8 + $0x100] sm:$0xff]   ;;  %v359_v46 = vld [vmem:[#allocation5 + $0x10] sm:$0xff] }
 0x149   :  { %3236 = vmatprep.subr.bf16.mxu1 %v3348_v50  ;;  %v1772_v62 = vpop.f32.mrf.mxu1  ;;  %v360_v50 = vld [vmem:[#allocation5 + $0x18] sm:$0xff]  ;;  %v375_v57 = vld [vmem:[#allocation5 + $0x90] sm:$0xff] }
 0x14a   :  { %3209 = vmatpush3.bf16.msra.mxu0 %v3333_v47  ;;  %v1773_v7 = vadd.f32 %v1772_v62, %v1720_v59  ;;  %v2117_v30 = vmax.f32 %v1771_v24, 0.0  ;;  %v383_v8 = vld [vmem:[#allocation5 + $0xd0] sm:$0xff] }
 0x14b   :  { %3210 = vmatprep.subr.bf16.mxu0 %v3334_v52 }
 0x14c   :  { %3237 = vmatpush3.bf16.msra.mxu1 %v3349_v63  ;;  %v2118_v18 = vmax.f32 %v1773_v7, 0.0  ;;  %v2133_v32 = vpack.c.bf16 %v2117_v30, %v2109_v29  ;;  %v368_v63 = vld [vmem:[#allocation5 + $0x58] sm:$0xff] }
 0x14d   :  { %3238 = vmatprep.subr.bf16.mxu1 %v3350_v54 }
 0x14e   :  { %3211 = vmatpush3.bf16.msra.mxu0 %v3335_v56  ;;  %v2134_v16 = vpack.c.bf16 %v2118_v18, %v2110_v17  ;;  %v384_v17 = vld [vmem:[#allocation5 + $0xd8] sm:$0xff] }
 0x14f   :  { %3212 = vmatprep.subr.bf16.mxu0 %v3336_v61 }
 0x150   :  { %3239 = vmatpush3.bf16.msra.mxu1 %v3351_v0 }
 0x151   :  { %3240 = vmatprep.subr.bf16.mxu1 %v3352_v2  ;;  %v376_v2 = vld [vmem:[#allocation5 + $0x98] sm:$0xff] }
 0x152   :  { %3213 = vmatpush3.bf16.msra.mxu0 %v3337_v3 }
 0x153   :  { %3214 = vmatprep.subr.bf16.mxu0 %v3338_v9 }
 0x154   :  { %3241 = vmatpush3.bf16.msra.mxu1 %v3353_v10 }
 0x155   :  { %3242 = vmatprep.subr.bf16.mxu1 %v3354_v13 }
 0x156   :  { %3215 = vmatpush3.bf16.msra.mxu0 %v3339_v15 }
 0x157   :  { %3256 = vmatprep.subr.bf16.mxu0 %v3356_v20 }
 0x158   :  { %3243 = vmatpush3.bf16.msra.mxu1 %v3355_v22 }
 0x159   :  { %2693 = vmatmul.mubr.bf16.vlgmr.msra.gmra.mxu0 %v2125_v25  ;;  %3284 = vmatprep.subr.bf16.mxu1 %v3372_v26  ;;  %v3374_v26 = vld [vmem:[#allocation8 + $0x1f0] sm:$0xff]  }
 0x15a   :  { %2700 = vmatprep.mubr.bf16.mxu0 %v2134_v16  ;;  %3257 = vmatpush3.bf16.msra.mxu0 %v3357_v27 }
 0x15b   :  { %3258 = vmatprep.subr.bf16.mxu0 %v3358_v28 }
 0x15e   :  { %3259 = vmatpush3.bf16.msra.mxu0 %v3359_v34 }
 0x15f   :  { %3260 = vmatprep.subr.bf16.mxu0 %v3360_v31  ;;  %v3375_v31 = vld [vmem:[#allocation8 + $0x1b0] sm:$0xff]  }
 0x161   :  { %2701 = vmatmul.mubr.bf16.gmra.mxu0 %v2133_v32  ;;  %v3376_v32 = vld [vmem:[#allocation8 + $0x1e8] sm:$0xff]  }
 0x162   :  { %3261 = vmatpush3.bf16.msra.mxu0 %v3361_v37 }
 0x163   :  { %3262 = vmatprep.subr.bf16.mxu0 %v3362_v33 }
 0x166   :  { %3263 = vmatpush3.bf16.msra.mxu0 %v3363_v35 }
 0x167   :  { %3264 = vmatprep.subr.bf16.mxu0 %v3364_v36  ;;  %v3377_v36 = vld [vmem:[#allocation8 + $0x1a8] sm:$0xff]  }
 0x16a   :  { %3265 = vmatpush3.bf16.msra.mxu0 %v3365_v38  ;;  %v3378_v38 = vld [vmem:[#allocation8 + $0x1e0] sm:$0xff]  }
 0x16b   :  { %3266 = vmatprep.subr.bf16.mxu0 %v3366_v39  ;;  %v3379_v39 = vld [vmem:[#allocation8 + $0x1a0] sm:$0xff]  }
 0x16e   :  { %3267 = vmatpush3.bf16.msra.mxu0 %v3367_v40  ;;  %v3380_v40 = vld [vmem:[#allocation8 + $0x1d8] sm:$0xff]  }
 0x16f   :  { %3268 = vmatprep.subr.bf16.mxu0 %v3368_v41  ;;  %v3381_v41 = vld [vmem:[#allocation8 + $0x198] sm:$0xff]  }
 0x172   :  { %3269 = vmatpush3.bf16.msra.mxu0 %v3369_v42  ;;  %v3382_v42 = vld [vmem:[#allocation8 + $0x1d0] sm:$0xff]  }
 0x173   :  { %3270 = vmatprep.subr.bf16.mxu0 %v3370_v43  ;;  %v3383_v43 = vld [vmem:[#allocation8 + $0x190] sm:$0xff]  }
 0x176   :  { %3271 = vmatpush3.bf16.msra.mxu0 %v3371_v44  ;;  %v3384_v44 = vld [vmem:[#allocation8 + $0x1c8] sm:$0xff]  }
 0x179   :  { %v1809_v45 = vpop.f32.mrf.mxu0 }
 0x17a   :  { %v1810_v58 = vadd.f32 %v1809_v45, %v359_v46  ;;  %v3385_v45 = vld [vmem:[#allocation8 + $0x188] sm:$0xff]   ;;  %v3387_v46 = vld [vmem:[#allocation8 + $0x180] sm:$0xff]  }
 0x17b   :  { %v1862_v47 = vpop.f32.mrf.mxu1  ;;  %v1811_v52 = vpop.f32.mrf.mxu0 }
 0x17c   :  { %v1812_v49 = vadd.f32 %v1811_v52, %v360_v50  ;;  %v1863_v0 = vadd.f32 %v1862_v47, %v1810_v58  ;;  %v3386_v50 = vld [vmem:[#allocation8 + $0x1c0] sm:$0xff]   ;;  %v362_v52 = vld [vmem:[#allocation5 + $0x28] sm:$0xff] }
 0x17d   :  { %v1864_v51 = vpop.f32.mrf.mxu1  ;;  %v1813_v53 = vpop.f32.mrf.mxu0  ;;  %v369_v58 = vld [vmem:[#allocation5 + $0x60] sm:$0xff] }
 0x17e   :  { %v1814_v54 = vadd.f32 %v1813_v53, %v367_v48  ;;  %v1865_v59 = vadd.f32 %v1864_v51, %v1812_v49  ;;  %v2095_v14 = vmax.f32 %v1863_v0, 0.0  ;;  %v361_v48 = vld [vmem:[#allocation5 + $0x20] sm:$0xff] }
 0x17f   :  { %v1866_v55 = vpop.f32.mrf.mxu1  ;;  %v1815_v56 = vpop.f32.mrf.mxu0 }
 0x180   :  { %v1867_v60 = vadd.f32 %v1866_v55, %v1814_v54  ;;  %v1816_v61 = vadd.f32 %v1815_v56, %v368_v63  ;;  %v2096_v9 = vmax.f32 %v1865_v59, 0.0  ;;  %v370_v56 = vld [vmem:[#allocation5 + $0x68] sm:$0xff] }
 0x181   :  { %v1868_v62 = vpop.f32.mrf.mxu1  ;;  %v1819_v1 = vpop.f32.mrf.mxu0 }
 0x182   :  { %v1869_v3 = vadd.f32 %v1868_v62, %v1816_v61  ;;  %v1820_v4 = vadd.f32 %v1819_v1, %v375_v57  ;;  %v2103_v6 = vmax.f32 %v1867_v60, 0.0  ;;  %v377_v61 = vld [vmem:[#allocation5 + $0xa0] sm:$0xff] }
 0x183   :  { %v1872_v5 = vpop.f32.mrf.mxu1  ;;  %v1821_v7 = vpop.f32.mrf.mxu0 }
 0x184   :  { %v2104_v10 = vmax.f32 %v1869_v3, 0.0  ;;  %v1822_v11 = vadd.f32 %v1821_v7, %v376_v2  ;;  %v1873_v13 = vadd.f32 %v1872_v5, %v1820_v4  ;;  %v2127_v21 = vpack.c.bf16 %v2103_v6, %v2095_v14  ;;  %v378_v5 = vld [vmem:[#allocation5 + $0xa8] sm:$0xff] }
 0x185   :  { %v1874_v12 = vpop.f32.mrf.mxu1  ;;  %v1823_v15 = vpop.f32.mrf.mxu0 }
 0x186   :  { %v2128_v18 = vpack.c.bf16 %v2104_v10, %v2096_v9  ;;  %v1824_v19 = vadd.f32 %v1823_v15, %v383_v8  ;;  %v1875_v20 = vadd.f32 %v1874_v12, %v1822_v11  ;;  %v2111_v28 = vmax.f32 %v1873_v13, 0.0  ;;  %v385_v11 = vld [vmem:[#allocation5 + $0xe0] sm:$0xff] }
 0x187   :  { %v1876_v22 = vpop.f32.mrf.mxu1  ;;  %v1825_v24 = vpop.f32.mrf.mxu0 }
 0x188   :  { %v1826_v16 = vadd.f32 %v1825_v24, %v384_v17  ;;  %v1877_v27 = vadd.f32 %v1876_v22, %v1824_v19  ;;  %2741 = vmatprep.mubr.bf16.mxu1 %v2128_v18  ;;  %v2112_v29 = vmax.f32 %v1875_v20, 0.0  ;;  %v386_v20 = vld [vmem:[#allocation5 + $0xe8] sm:$0xff] }
 0x189   :  { %v1878_v25 = vpop.f32.mrf.mxu1  ;;  %2742 = vmatmul.mubr.bf16.vlgmr.msra.gmra.mxu1 %v2127_v21 }
 0x18a   :  { %v2119_v30 = vmax.f32 %v1877_v27, 0.0  ;;  %v1879_v34 = vadd.f32 %v1878_v25, %v1826_v16  ;;  %3285 = vmatpush3.bf16.msra.mxu1 %v3373_v23 }
 0x18b   :  { %3286 = vmatprep.subr.bf16.mxu1 %v3374_v26 }
 0x18c   :  { %v2120_v37 = vmax.f32 %v1879_v34, 0.0  ;;  %v2135_v33 = vpack.c.bf16 %v2119_v30, %v2111_v28 }
 0x18e   :  { %v2136_v35 = vpack.c.bf16 %v2120_v37, %v2112_v29  ;;  %3287 = vmatpush3.bf16.msra.mxu1 %v3375_v31 }
 0x18f   :  { %3288 = vmatprep.subr.bf16.mxu1 %v3376_v32 }
 0x190   :  { %2749 = vmatprep.mubr.bf16.mxu1 %v2136_v35 }
 0x191   :  { %2750 = vmatmul.mubr.bf16.gmra.mxu1 %v2135_v33 }
 0x192   :  { %3289 = vmatpush3.bf16.msra.mxu1 %v3377_v36  ;;  %v364_v36 = vld [vmem:[#allocation5 + $0x38] sm:$0xff] }
 0x193   :  { %3290 = vmatprep.subr.bf16.mxu1 %v3378_v38  ;;  %v363_v38 = vld [vmem:[#allocation5 + $0x30] sm:$0xff] }
 0x196   :  { %3291 = vmatpush3.bf16.msra.mxu1 %v3379_v39 }
 0x197   :  { %3292 = vmatprep.subr.bf16.mxu1 %v3380_v40 }
 0x19a   :  { %3293 = vmatpush3.bf16.msra.mxu1 %v3381_v41  ;;  %v371_v41 = vld [vmem:[#allocation5 + $0x70] sm:$0xff] }
 0x19b   :  { %3294 = vmatprep.subr.bf16.mxu1 %v3382_v42 }
 0x19e   :  { %3295 = vmatpush3.bf16.msra.mxu1 %v3383_v43 }
 0x19f   :  { %3296 = vmatprep.subr.bf16.mxu1 %v3384_v44 }
 0x1a2   :  { %3297 = vmatpush3.bf16.msra.mxu1 %v3385_v45 }
 0x1a3   :  { %3298 = vmatprep.subr.bf16.mxu1 %v3386_v50  ;;  %v372_v50 = vld [vmem:[#allocation5 + $0x78] sm:$0xff] }
 0x1a6   :  { %3299 = vmatpush3.bf16.msra.mxu1 %v3387_v46 }
 0x1b9   :  { %v1915_v47 = vpop.f32.mrf.mxu0 }
 0x1ba   :  { %v1916_v54 = vadd.f32 %v1915_v47, %v361_v48 }
 0x1bb   :  { %v1968_v49 = vpop.f32.mrf.mxu1  ;;  %v1917_v51 = vpop.f32.mrf.mxu0 }
 0x1bc   :  { %v1918_v53 = vadd.f32 %v1917_v51, %v362_v52  ;;  %v1969_v3 = vadd.f32 %v1968_v49, %v1916_v54  ;;  %v380_v54 = vld [vmem:[#allocation5 + $0xb8] sm:$0xff] }
 0x1bd   :  { %v1970_v63 = vpop.f32.mrf.mxu1  ;;  %v1919_v55 = vpop.f32.mrf.mxu0 }
 0x1be   :  { %v1920_v57 = vadd.f32 %v1919_v55, %v369_v58  ;;  %v1971_v62 = vadd.f32 %v1970_v63, %v1918_v53  ;;  %v2097_v17 = vmax.f32 %v1969_v3, 0.0 }
 0x1bf   :  { %v1972_v59 = vpop.f32.mrf.mxu1  ;;  %v1921_v60 = vpop.f32.mrf.mxu0 }
 0x1c0   :  { %v1973_v0 = vadd.f32 %v1972_v59, %v1920_v57  ;;  %v1922_v1 = vadd.f32 %v1921_v60, %v370_v56  ;;  %v2098_v12 = vmax.f32 %v1971_v62, 0.0  ;;  %v379_v56 = vld [vmem:[#allocation5 + $0xb0] sm:$0xff] }
 0x1c1   :  { %v1974_v2 = vpop.f32.mrf.mxu1  ;;  %v1925_v4 = vpop.f32.mrf.mxu0 }
 0x1c2   :  { %v1975_v6 = vadd.f32 %v1974_v2, %v1922_v1  ;;  %v1926_v7 = vadd.f32 %v1925_v4, %v377_v61  ;;  %v2105_v9 = vmax.f32 %v1973_v0, 0.0  ;;  %v387_v61 = vld [vmem:[#allocation5 + $0xf0] sm:$0xff] }
 0x1c3   :  { %v1978_v8 = vpop.f32.mrf.mxu1  ;;  %v1927_v10 = vpop.f32.mrf.mxu0 }
 0x1c4   :  { %v2106_v14 = vmax.f32 %v1975_v6, 0.0  ;;  %v1928_v13 = vadd.f32 %v1927_v10, %v378_v5  ;;  %v1979_v18 = vadd.f32 %v1978_v8, %v1926_v7  ;;  %v2129_v26 = vpack.c.bf16 %v2105_v9, %v2097_v17  ;;  %v388_v6 = vld [vmem:[#allocation5 + $0xf8] sm:$0xff] }
 0x1c5   :  { %v1980_v15 = vpop.f32.mrf.mxu1  ;;  %v1929_v19 = vpop.f32.mrf.mxu0 }
 0x1c6   :  { %v2130_v22 = vpack.c.bf16 %v2106_v14, %v2098_v12  ;;  %v1930_v23 = vadd.f32 %v1929_v19, %v385_v11  ;;  %v1981_v21 = vadd.f32 %v1980_v15, %v1928_v13  ;;  %v2113_v29 = vmax.f32 %v1979_v18, 0.0 }
 0x1c7   :  { %v1982_v24 = vpop.f32.mrf.mxu1  ;;  %v1931_v16 = vpop.f32.mrf.mxu0 }
 0x1c8   :  { %v1932_v27 = vadd.f32 %v1931_v16, %v386_v20  ;;  %v1983_v25 = vadd.f32 %v1982_v24, %v1930_v23  ;;  %2790 = vmatprep.mubr.bf16.mxu0 %v2130_v22  ;;  %v2114_v30 = vmax.f32 %v1981_v21, 0.0 }
 0x1c9   :  { %v1984_v28 = vpop.f32.mrf.mxu1  ;;  %2791 = vmatmul.mubr.bf16.vlgmr.msra.gmra.mxu0 %v2129_v26 }
 0x1ca   :  { %v2121_v34 = vmax.f32 %v1983_v25, 0.0  ;;  %v1985_v31 = vadd.f32 %v1984_v28, %v1932_v27 }
 0x1cc   :  { %v2122_v32 = vmax.f32 %v1985_v31, 0.0  ;;  %v2137_v37 = vpack.c.bf16 %v2121_v34, %v2113_v29 }
 0x1ce   :  { %v2138_v33 = vpack.c.bf16 %v2122_v32, %v2114_v30 }
 0x1d0   :  { %2798 = vmatprep.mubr.bf16.mxu0 %v2138_v33 }
 0x1d1   :  { %2799 = vmatmul.mubr.bf16.gmra.mxu0 %v2137_v37 }
 0x1f9   :  { %v2021_v35 = vpop.f32.mrf.mxu0 }
 0x1fa   :  { %v2022_v44 = vadd.f32 %v2021_v35, %v363_v38 }
 0x1fb   :  { %v2074_v39 = vpop.f32.mrf.mxu1  ;;  %v2023_v40 = vpop.f32.mrf.mxu0 }
 0x1fc   :  { %v2024_v42 = vadd.f32 %v2023_v40, %v364_v36  ;;  %v2075_v53 = vadd.f32 %v2074_v39, %v2022_v44  ;;  %v3135_v44 = vld [vmem:[%s3623_s4] ss:$0 sm:$0xff]  ;;  %s3505_s4 = smov [#allocation10]  }
 0x1fd   :  { %v2076_v43 = vpop.f32.mrf.mxu1  ;;  %v2025_v45 = vpop.f32.mrf.mxu0  ;;  %s2865_s16 = sshll.u32 %s3505_s4, 4  ;;  %s2866_s16 = int_to_ptr.vmem [resolvable:$true] %s2865_s16 }
 0x1fe   :  { %v2026_v46 = vadd.f32 %v2025_v45, %v371_v41  ;;  %v2077_v48 = vadd.f32 %v2076_v43, %v2024_v42  ;;  %v2099_v3 = vmax.f32 %v2075_v53, 0.0  ;;  %s3468_s17 = scalar_lea.vmem %s2866_s16, 512  ;;  %p3473_p7 = scmp.lt.s32.totalorder %s2866_s16, %s2866_s16 }
 0x1ff   :  { %v2078_v47 = vpop.f32.mrf.mxu1  ;;  %v2027_v52 = vpop.f32.mrf.mxu0  ;;  %p3469_p6 = scmp.ne.s32.totalorder %s2866_s16, %s3468_s17  ;;  %p3474_p8 = scmp.lt.s32.totalorder %s3468_s17, %s3468_s17 }
 0x200   :  { %v2079_v49 = vadd.f32 %v2078_v47, %v2026_v46  ;;  %v2028_v51 = vadd.f32 %v2027_v52, %v372_v50  ;;  %v2100_v62 = vmax.f32 %v2077_v48, 0.0 }
 0x201   :  { %v2080_v58 = vpop.f32.mrf.mxu1  ;;  %v2031_v63 = vpop.f32.mrf.mxu0  ;;  %p3475_p9 = por %p3474_p8, %p3473_p7 }
 0x202   :  { %v2081_v55 = vadd.f32 %v2080_v58, %v2028_v51  ;;  %v2107_v59 = vmax.f32 %v2079_v49, 0.0  ;;  %v2032_v4 = vadd.f32 %v2031_v63, %v379_v56 }
 0x203   :  { %v2084_v57 = vpop.f32.mrf.mxu1  ;;  %v2033_v60 = vpop.f32.mrf.mxu0  ;;  %p3476_p10 = pnand %p3475_p9, %p3469_p6 }
 0x204   :  { %v2108_v0 = vmax.f32 %v2081_v55, 0.0  ;;  %v2034_v1 = vadd.f32 %v2033_v60, %v380_v54  ;;  %v2131_v10 = vpack.c.bf16 %v2107_v59, %v2099_v3  ;;  %v2085_v15 = vadd.f32 %v2084_v57, %v2032_v4 }
 0x205   :  { %v2086_v2 = vpop.f32.mrf.mxu1  ;;  %v2035_v5 = vpop.f32.mrf.mxu0 }
 0x206   :  { %v2132_v7 = vpack.c.bf16 %v2108_v0, %v2100_v62  ;;  %v2036_v8 = vadd.f32 %v2035_v5, %v387_v61  ;;  %v2087_v12 = vadd.f32 %v2086_v2, %v2034_v1  ;;  %v2115_v23 = vmax.f32 %v2085_v15, 0.0 }
 0x207   :  { %v2088_v9 = vpop.f32.mrf.mxu1  ;;  %v2037_v11 = vpop.f32.mrf.mxu0 }
 0x208   :  { %v2089_v14 = vadd.f32 %v2088_v9, %v2036_v8  ;;  %v2038_v13 = vadd.f32 %v2037_v11, %v388_v6  ;;  %2839 = vmatprep.mubr.bf16.mxu1 %v2132_v7  ;;  %v2116_v20 = vmax.f32 %v2087_v12, 0.0 }
 0x209   :  { %v2090_v17 = vpop.f32.mrf.mxu1  ;;  %2840 = vmatmul.mubr.bf16.vlgmr.msra.gmra.mxu1 %v2131_v10 }
 0x20a   :  { %v2091_v18 = vadd.f32 %v2090_v17, %v2038_v13  ;;  %v2123_v19 = vmax.f32 %v2089_v14, 0.0 }
 0x20c   :  { %v2124_v22 = vmax.f32 %v2091_v18, 0.0  ;;  %v2139_v24 = vpack.c.bf16 %v2123_v19, %v2115_v23 }
 0x20e   :  { %v2140_v21 = vpack.c.bf16 %v2124_v22, %v2116_v20 }
 0x210   :  { %2847 = vmatprep.mubr.bf16.mxu1 %v2140_v21 }
 0x211   :  { %2848 = vmatmul.mubr.bf16.gmra.mxu1 %v2139_v24 }
 0x219   :  { %v3216_v26 = vpop.f32.mrf.mxu0 }
 0x21b   :  { %v3217_v16 = vpop.f32.mrf.mxu0 }
 0x21c   :  { %v3218_v43 = vadd.f32 %v3217_v16, %v3216_v26 }
 0x21d   :  { %v3219_v27 = vpop.f32.mrf.mxu0 }
 0x21e   :  { %v2695_v47 = vadd.f32 %v3218_v43, %v3135_v44 }
 0x21f   :  { %v3220_v25 = vpop.f32.mrf.mxu0 }
 0x220   :  { %v3221_v52 = vadd.f32 %v3220_v25, %v3219_v27 }
 0x221   :  { %v3222_v28 = vpop.f32.mrf.mxu0 }
 0x222   :  { %v2698_v55 = vadd.f32 %v3221_v52, %v3135_v44 }
 0x223   :  { %v3223_v29 = vpop.f32.mrf.mxu0 }
 0x224   :  { %v3224_v63 = vadd.f32 %v3223_v29, %v3222_v28 }
 0x225   :  { %v3225_v34 = vpop.f32.mrf.mxu0 }
 0x226   :  { %v2703_v2 = vadd.f32 %v3224_v63, %v3135_v44 }
 0x227   :  { %v3226_v32 = vpop.f32.mrf.mxu0 }
 0x228   :  { %v3227_v4 = vadd.f32 %v3226_v32, %v3225_v34 }
 0x22a   :  { %v2706_v13 = vadd.f32 %v3227_v4, %v3135_v44 }
 0x249   :  { %v3244_v30 = vpop.f32.mrf.mxu1 }
 0x24b   :  { %v3245_v31 = vpop.f32.mrf.mxu1 }
 0x24c   :  { %v3246_v50 = vadd.f32 %v3245_v31, %v3244_v30 }
 0x24d   :  { %v3247_v37 = vpop.f32.mrf.mxu1 }
 0x24e   :  { %v2744_v58 = vadd.f32 %v3246_v50, %v2695_v47 }
 0x24f   :  { %v3248_v35 = vpop.f32.mrf.mxu1 }
 0x250   :  { %v3249_v53 = vadd.f32 %v3248_v35, %v3247_v37 }
 0x251   :  { %v3250_v38 = vpop.f32.mrf.mxu1 }
 0x252   :  { %v2747_v62 = vadd.f32 %v3249_v53, %v2698_v55 }
 0x253   :  { %v3251_v40 = vpop.f32.mrf.mxu1 }
 0x254   :  { %v3252_v0 = vadd.f32 %v3251_v40, %v3250_v38 }
 0x255   :  { %v3253_v42 = vpop.f32.mrf.mxu1 }
 0x256   :  { %v2752_v10 = vadd.f32 %v3252_v0, %v2703_v2 }
 0x257   :  { %v3254_v46 = vpop.f32.mrf.mxu1 }
 0x258   :  { %v3255_v11 = vadd.f32 %v3254_v46, %v3253_v42 }
 0x25a   :  { %v2755_v20 = vadd.f32 %v3255_v11, %v2706_v13 }
 0x289   :  { %v3272_v33 = vpop.f32.mrf.mxu0 }
 0x28b   :  { %v3273_v36 = vpop.f32.mrf.mxu0 }
 0x28c   :  { %v3274_v48 = vadd.f32 %v3273_v36, %v3272_v33 }
 0x28d   :  { %v3275_v39 = vpop.f32.mrf.mxu0 }
 0x28e   :  { %v2793_v56 = vadd.f32 %v3274_v48, %v2744_v58 }
 0x28f   :  { %v3276_v41 = vpop.f32.mrf.mxu0 }
 0x290   :  { %v3277_v57 = vadd.f32 %v3276_v41, %v3275_v39 }
 0x291   :  { %v3278_v45 = vpop.f32.mrf.mxu0 }
 0x292   :  { %v2796_v5 = vadd.f32 %v3277_v57, %v2747_v62 }
 0x293   :  { %v3279_v49 = vpop.f32.mrf.mxu0 }
 0x294   :  { %v3280_v6 = vadd.f32 %v3279_v49, %v3278_v45 }
 0x295   :  { %v3281_v60 = vpop.f32.mrf.mxu0 }
 0x296   :  { %v2801_v15 = vadd.f32 %v3280_v6, %v2752_v10 }
 0x297   :  { %v3282_v8 = vpop.f32.mrf.mxu0 }
 0x298   :  { %v3283_v17 = vadd.f32 %v3282_v8, %v3281_v60 }
 0x29a   :  { %v2804_v21 = vadd.f32 %v3283_v17, %v2755_v20 }
 0x2c9   :  { %v3300_v51 = vpop.f32.mrf.mxu1 }
 0x2cb   :  { %v3301_v54 = vpop.f32.mrf.mxu1 }
 0x2cc   :  { %v3302_v59 = vadd.f32 %v3301_v54, %v3300_v51 }
 0x2cd   :  { %v3303_v61 = vpop.f32.mrf.mxu1 }
 0x2ce   :  { %v2842_v1 = vadd.f32 %v3302_v59, %v2793_v56 }
 0x2cf   :  { %v3304_v3 = vpop.f32.mrf.mxu1 }
 0x2d0   :  { %2856 = vst [vmem:[#allocation10] sm:$0xff] %v2842_v1  ;;  %v3305_v7 = vadd.f32 %v3304_v3, %v3303_v61 }
 0x2d1   :  { %v3306_v9 = vpop.f32.mrf.mxu1 }
 0x2d2   :  { %v2845_v12 = vadd.f32 %v3305_v7, %v2796_v5 }
 0x2d3   :  { %v3307_v14 = vpop.f32.mrf.mxu1 }
 0x2d4   :  { %2857 = vst [vmem:[#allocation10 + $0x8] sm:$0xff] %v2845_v12  ;;  %v3308_v18 = vadd.f32 %v3307_v14, %v3306_v9 }
 0x2d5   :  { %v3309_v19 = vpop.f32.mrf.mxu1 }
 0x2d6   :  { %v2850_v22 = vadd.f32 %v3308_v18, %v2801_v15 }
 0x2d7   :  { %v3310_v23 = vpop.f32.mrf.mxu1 }
 0x2d8   :  { %2858 = vst [vmem:[#allocation10 + $0x10] sm:$0xff] %v2850_v22  ;;  %v3311_v24 = vadd.f32 %v3310_v23, %v3309_v19 }
 0x2da   :  { %v2853_v26 = vadd.f32 %v3311_v24, %v2804_v21 }
 0x2dc   :  { %2859 = vst [vmem:[#allocation10 + $0x18] sm:$0xff] %v2853_v26 }
 0x2dd   :  { %3479 = shalt.err (!%p3476_p10)
}
 0x2de   :  { %s3506_s18 = smov 128   ;;  %s3507_s19 = smov 8  }
 0x2df   :  { %2871 = dma.vmem_to_hbm [thread:$0]  %s2866_s16, 512, %s3624_s5, [#allocation4], %s3506_s18, %s3506_s18, %s3507_s19  }
 0x2e0   :  { %3494 = dma.done.wait [#allocation4], 512  }
 0x2e1   :  { %3495 = vsyncadd [#allocation4], 4294966784 }
 0x2e2   :  { %2875 = vsyncpa [#allocation3], 1 }
 0x2e3   :  { %2876 = vsyncpa [#allocation6], 1 }
 0x2e4   :  { %2877 = vsyncpa [#allocation9], 1 }
 0x2e5   :  { %2878 = vsyncpa [#allocation4], 1 }

</bundles_post_ra>
